<compile_context>
chip_gen: v7x
topology: tpu7x:2x2x1
jax: 0.10.0
libtpu: 0.0.40
codegen_flags: <defaults>
</compile_context>

<pallas_src>
import functools

import jax
import jax.numpy as jnp
from jax.experimental import pallas as pl
from jax.experimental.pallas import tpu as pltpu


def _round_up(x, m):
    return ((x + m - 1) // m) * m


@functools.lru_cache(maxsize=None)
def _vmem_limit():
    """Generation-aware VMEM budget (feedback: don't hard-code 48 MiB)."""
    try:
        cap = int(pltpu.get_tpu_info().vmem_capacity_bytes)
    except Exception:
        cap = 64 * 1024 * 1024          # conservative fallback (v7x per-core)
    return max(32 * 1024 * 1024, min((cap * 3) // 4, 100 * 1024 * 1024))


# ---------------------------------------------------------------------------
# Linear + softmax kernels
# ---------------------------------------------------------------------------
def _fused_linear_softmax_kernel(x_ref, w_ref, b_ref, o_ref):
    # Whole vocab resident: single-pass softmax per row tile.
    logits = (jnp.dot(x_ref[...].astype(jnp.bfloat16), w_ref[...],
                      preferred_element_type=jnp.float32) + b_ref[...])
    m = jnp.max(logits, axis=-1, keepdims=True)
    e = jnp.exp(logits - m)
    s = jnp.sum(e, axis=-1, keepdims=True)
    o_ref[...] = e * pl.reciprocal(s, approx=True)


def _logits_stats_kernel(x_ref, w_ref, b_ref, logits_ref, m_ref, l_ref):
    # V-tiled phase 1: tiled GEMM + online (max, sum) accumulators per row.
    j = pl.program_id(1)

    @pl.when(j == 0)
    def _():
        m_ref[...] = jnp.full(m_ref.shape, -jnp.inf, jnp.float32)
        l_ref[...] = jnp.zeros(l_ref.shape, jnp.float32)

    logits = (jnp.dot(x_ref[...].astype(jnp.bfloat16), w_ref[...],
                      preferred_element_type=jnp.float32) + b_ref[...])
    logits_ref[...] = logits

    m_prev = m_ref[...]
    m_new = jnp.maximum(m_prev, jnp.max(logits, axis=-1, keepdims=True))
    l_ref[...] = (l_ref[...] * jnp.exp(m_prev - m_new)
                  + jnp.sum(jnp.exp(logits - m_new), axis=-1, keepdims=True))
    m_ref[...] = m_new


def _softmax_normalize_kernel(logits_ref, m_ref, l_ref, o_ref):
    # V-tiled phase 2: elementwise normalize with the final row stats.
    o_ref[...] = (jnp.exp(logits_ref[...] - m_ref[...])
                  * pl.reciprocal(l_ref[...], approx=True))


def linear_softmax(x2d, w, b, *, tile_n=256, tile_v=None):
    """softmax(x2d @ w + b), tiled over rows (and optionally vocab).

    x2d: (N0, K) f32   w: (K, Vp) bf16   b: (1, Vp) f32  ->  (Npad, Vp) f32
    K and Vp are multiples of 128 (callers pad).
    """
    N0, K = x2d.shape
    Vp = w.shape[1]
    vmem = _vmem_limit()

    # Row tiling: pad only N0 = B*T rows (feedback: no B->8 padding here).
    # TODO(synk): pick 128 on v5e specifically (MXU is 128-wide there).
    tile_n = max(8, min(_round_up(tile_n, 8), _round_up(N0, 8)))
    N = _round_up(N0, tile_n)
    if N != N0:
        x2d = jnp.pad(x2d, ((0, N - N0), (0, 0)))
    grid_rows = N // tile_n

    # Fused path keeps the whole (K, Vp) bf16 panel resident across the grid.
    # TODO(synk): single-buffer the constant-index weight/bias specs with
    # pipeline_mode=pl.Buffered(1) once verified on all target generations.
    fused_bytes = (2 * tile_n * K * 4 + 2 * K * Vp * 2 + 2 * Vp * 4
                   + 2 * tile_n * Vp * 4)
    use_tiled = (tile_v is not None) or (fused_bytes > (6 * vmem) // 10)

    if not use_tiled:
        cost = pl.CostEstimate(
            flops=2 * N * K * Vp, transcendentals=N * Vp,
            bytes_accessed=4 * N * K + 2 * K * Vp + 4 * Vp + 4 * N * Vp)
        return pl.pallas_call(
            _fused_linear_softmax_kernel,
            out_shape=jax.ShapeDtypeStruct((N, Vp), jnp.float32),
            grid_spec=pltpu.PrefetchScalarGridSpec(
                num_scalar_prefetch=0,
                grid=(grid_rows,),
                in_specs=[
                    pl.BlockSpec((tile_n, K), lambda i: (i, 0)),
                    pl.BlockSpec((K, Vp), lambda i: (0, 0)),   # resident panel
                    pl.BlockSpec((1, Vp), lambda i: (0, 0)),   # resident bias
                ],
                out_specs=pl.BlockSpec((tile_n, Vp), lambda i: (i, 0)),
            ),
            compiler_params=pltpu.CompilerParams(
                dimension_semantics=("parallel",),
                vmem_limit_bytes=vmem),
            cost_estimate=cost,
        )(x2d, w, b)

    # ---- V-tiled two-phase online softmax (bounded VMEM for big vocab) ----
    if tile_v is None:
        tile_v = 2048
    tile_v = min(max(128, (tile_v // 128) * 128), Vp)
    while Vp % tile_v:
        tile_v -= 128
    grid = (grid_rows, Vp // tile_v)

    cost1 = pl.CostEstimate(
        flops=2 * N * K * Vp, transcendentals=2 * N * Vp,
        bytes_accessed=4 * N * K + 2 * K * Vp + 4 * Vp + 4 * N * Vp + 8 * N)
    logits, m, l = pl.pallas_call(
        _logits_stats_kernel,
        out_shape=(jax.ShapeDtypeStruct((N, Vp), jnp.float32),
                   jax.ShapeDtypeStruct((N, 1), jnp.float32),
                   jax.ShapeDtypeStruct((N, 1), jnp.float32)),
        grid_spec=pltpu.PrefetchScalarGridSpec(
            num_scalar_prefetch=0,
            grid=grid,
            in_specs=[
                pl.BlockSpec((tile_n, K), lambda i, j: (i, 0)),   # resident over j
                pl.BlockSpec((K, tile_v), lambda i, j: (0, j)),   # streamed panel
                pl.BlockSpec((1, tile_v), lambda i, j: (0, j)),
            ],
            out_specs=[
                pl.BlockSpec((tile_n, tile_v), lambda i, j: (i, j)),
                pl.BlockSpec((tile_n, 1), lambda i, j: (i, 0)),   # running max
                pl.BlockSpec((tile_n, 1), lambda i, j: (i, 0)),   # running sum
            ],
        ),
        compiler_params=pltpu.CompilerParams(
            dimension_semantics=("parallel", "arbitrary"),
            vmem_limit_bytes=vmem),
        cost_estimate=cost1,
    )(x2d, w, b)

    return pl.pallas_call(
        _softmax_normalize_kernel,
        out_shape=jax.ShapeDtypeStruct((N, Vp), jnp.float32),
        grid_spec=pltpu.PrefetchScalarGridSpec(
            num_scalar_prefetch=0,
            grid=grid,
            in_specs=[
                pl.BlockSpec((tile_n, tile_v), lambda i, j: (i, j)),
                pl.BlockSpec((tile_n, 1), lambda i, j: (i, 0)),
                pl.BlockSpec((tile_n, 1), lambda i, j: (i, 0)),
            ],
            out_specs=pl.BlockSpec((tile_n, tile_v), lambda i, j: (i, j)),
        ),
        compiler_params=pltpu.CompilerParams(
            dimension_semantics=("parallel", "parallel"),
            vmem_limit_bytes=vmem),
    )(logits, m, l)


# ---------------------------------------------------------------------------
# GRU recurrence: T-chunked grid, h carried in VMEM scratch, pipelined DMA.
# ---------------------------------------------------------------------------
def gru_recurrence(xproj, h0, wh, bh, *, t_chunk=32):
    """xproj: (T, Bp, 3*Hp) f32 = x@W_i + b_i (gate-padded layout, via table)
       h0:    (Bp, Hp)     f32
       wh:    (Hp, 3*Hp)   bf16 fused recurrent weights
       bh:    (1, 3*Hp)    f32
    Returns (out (T, Bp, Hp) f32, h_final (Bp, Hp) f32)."""
    T, Bp, H3p = xproj.shape
    Hp = h0.shape[-1]
    assert H3p == 3 * Hp

    t_chunk = max(1, min(t_chunk, T))
    n_chunks = pl.cdiv(T, t_chunk)
    Tp = n_chunks * t_chunk
    if Tp != T:          # zero-pad the tail chunk; padded steps never execute
        xproj = jnp.pad(xproj, ((0, Tp - T), (0, 0), (0, 0)))
    full_chunks = (T % t_chunk == 0)

    def kernel(xproj_ref, h0_ref, wh_ref, bh_ref, out_ref, hfin_ref, h_sc):
        i = pl.program_id(0)

        @pl.when(i == 0)
        def _():
            h_sc[...] = h0_ref[...]

        bh_v = bh_ref[...]          # small, hoisted

        def step(t, h):
            gx = xproj_ref[t]                                   # (Bp, 3Hp)
            # Feedback: stream W_h from VMEM inside the dot (no hoisted load).
            gh = jnp.dot(h.astype(jnp.bfloat16), wh_ref[...],
                         preferred_element_type=jnp.float32) + bh_v
            r = jax.nn.sigmoid(gx[:, :Hp] + gh[:, :Hp])
            z = jax.nn.sigmoid(gx[:, Hp:2 * Hp] + gh[:, Hp:2 * Hp])
            n = jnp.tanh(gx[:, 2 * Hp:] + r * gh[:, 2 * Hp:])
            h_new = (1.0 - z) * n + z * h
            out_ref[t] = h_new                                  # lane-dense store
            return h_new

        h_prev = h_sc[...]
        if full_chunks:
            # Static trip count; capped unroll (feedback: no huge full unroll).
            h_fin = jax.lax.fori_loop(0, t_chunk, step, h_prev,
                                      unroll=min(t_chunk, 8))
        else:
            n_valid = jnp.minimum(t_chunk, T - i * t_chunk)
            h_fin = jax.lax.fori_loop(0, n_valid, step, h_prev)
        h_sc[...] = h_fin

        @pl.when(i == n_chunks - 1)
        def _():
            hfin_ref[...] = h_fin

    out_p, hfin = pl.pallas_call(
        kernel,
        out_shape=(jax.ShapeDtypeStruct((Tp, Bp, Hp), jnp.float32),
                   jax.ShapeDtypeStruct((Bp, Hp), jnp.float32)),
        grid_spec=pltpu.PrefetchScalarGridSpec(
            num_scalar_prefetch=0,
            grid=(n_chunks,),
            in_specs=[
                pl.BlockSpec((t_chunk, Bp, H3p), lambda i: (i, 0, 0)),
                pl.BlockSpec((Bp, Hp), lambda i: (0, 0)),
                pl.BlockSpec((Hp, H3p), lambda i: (0, 0)),
                pl.BlockSpec((1, H3p), lambda i: (0, 0)),
            ],
            out_specs=[
                pl.BlockSpec((t_chunk, Bp, Hp), lambda i: (i, 0, 0)),
                pl.BlockSpec((Bp, Hp), lambda i: (0, 0)),
            ],
            scratch_shapes=[pltpu.VMEM((Bp, Hp), jnp.float32)],   # h carry
        ),
        compiler_params=pltpu.CompilerParams(
            dimension_semantics=("arbitrary",),
            vmem_limit_bytes=_vmem_limit()),
    )(xproj, h0, wh, bh)
    # TODO(synk): on v7x with Bp >= 16, add a leading "parallel" axis splitting
    # the batch over the 2 TensorCores; optionally bf16 gate pre-activations on
    # v6e/v7x (not v5e).
    return out_p[:T], hfin


# ---------------------------------------------------------------------------
# Parameter preparation (done once): fuse gates, fold emb@W_i, pad, bf16 cast.
# ---------------------------------------------------------------------------
def prepare_params(params, lane=128):
    V, E = params["embedding"].shape
    H = params["w_hh"].shape[1]
    Hp, Vp = _round_up(H, lane), _round_up(V, lane)

    def fuse_gates(w, in_dim, in_dim_p, dtype):
        # w: (3H, in_dim) PyTorch [r; z; n] -> (in_dim_p, 3*Hp); gate g occupies
        # columns [g*Hp, g*Hp + H), zero elsewhere.
        out = jnp.zeros((in_dim_p, 3 * Hp), jnp.float32)
        for g in range(3):
            out = out.at[:in_dim, g * Hp:g * Hp + H].set(
                w[g * H:(g + 1) * H, :].T.astype(jnp.float32))
        return out.astype(dtype)

    def fuse_bias(b):
        out = jnp.zeros((1, 3 * Hp), jnp.float32)
        for g in range(3):
            out = out.at[0, g * Hp:g * Hp + H].set(
                b[g * H:(g + 1) * H].astype(jnp.float32))
        return out

    # Feedback: fold the whole input projection into the (static) embedding:
    # proj_table[v] = embedding[v] @ W_i + b_i, so the runtime input projection
    # becomes the gather that already existed.  Kept f32 for accuracy.
    wi = fuse_gates(params["w_ih"], E, E, jnp.float32)
    bi = fuse_bias(params["b_ih"])
    proj_table = params["embedding"].astype(jnp.float32) @ wi + bi   # (V, 3Hp)

    w_lin = jnp.zeros((Hp, Vp), jnp.float32).at[:H, :V].set(
        params["w_out"].T.astype(jnp.float32)).astype(jnp.bfloat16)
    # Padded vocab columns get a large (finite, f32) negative bias so softmax
    # assigns them exactly 0; logits stay f32 so no bf16-overflow concern.
    b_lin = jnp.full((1, Vp), -1e9, jnp.float32).at[0, :V].set(
        params["b_out"].astype(jnp.float32))

    return {
        "dims": (H, V, Hp, Vp),
        "proj_table": proj_table,                               # f32 (V, 3Hp)
        "wh": fuse_gates(params["w_hh"], H, Hp, jnp.bfloat16),  # bf16 MXU op
        "bh": fuse_bias(params["b_hh"]),                        # f32
        "w_lin": w_lin,                                         # bf16 MXU op
        "b_lin": b_lin,                                         # f32
    }


# ---------------------------------------------------------------------------
# Decoder forward
# ---------------------------------------------------------------------------
def decoder_forward(tokens, hidden, prep, *, t_chunk=32, row_tile=256,
                    vocab_tile=None):
    B, T, _ = tokens.shape
    H, V, Hp, Vp = prep["dims"]
    Bp = _round_up(B, 8)

    # 1) Embedding + input projection in ONE gather (time-major directly, so
    #    no wide-slab transpose).  Batch padded to 8 only for the recurrence.
    ids_t = jnp.transpose(tokens[..., 0], (1, 0))             # (T, B) int32
    xproj = prep["proj_table"][ids_t]                         # (T, B, 3Hp) f32
    xproj = jnp.pad(xproj, ((0, 0), (0, Bp - B), (0, 0)))     # (T, Bp, 3Hp)

    h0 = jnp.pad(hidden[0].astype(jnp.float32), ((0, Bp - B), (0, Hp - H)))

    # 2) Sequential recurrence: T-chunked, pipelined Pallas grid.
    out_p, hfin_p = gru_recurrence(xproj, h0, prep["wh"], prep["bh"],
                                   t_chunk=t_chunk)

    # 3) Linear + softmax on batch-first rows of the real batch only; the
    #    narrow Hp-wide slab is transposed here so the wide Vp softmax slab
    #    reshapes directly to (B, T, Vp) with no transpose.
    out_bt = jnp.transpose(out_p[:, :B, :], (1, 0, 2))        # (B, T, Hp)
    sm_rows = linear_softmax(out_bt.reshape(B * T, Hp),
                             prep["w_lin"], prep["b_lin"],
                             tile_n=row_tile, tile_v=vocab_tile)
    softmax = sm_rows[:B * T].reshape(B, T, Vp)[:, :, :V]     # (B, T, V)

    output = out_bt[:, :, :H]                                 # (B, T, H)
    hidden_state = hfin_p[:B, :H][None]                       # (1, B, H)
    return output, softmax, hidden_state


# ---------------------------------------------------------------------------
# Pure-JAX reference (PyTorch nn.GRU / nn.Linear / Softmax math)
# ---------------------------------------------------------------------------
def decoder_reference(tokens, hidden, params):
    H = params["w_hh"].shape[1]
    emb = params["embedding"][tokens[..., 0]].astype(jnp.float32)  # (B,T,E)
    h = hidden[0].astype(jnp.float32)
    wih, whh = params["w_ih"], params["w_hh"]
    bih, bhh = params["b_ih"], params["b_hh"]

    def step(h, x):
        gi = x @ wih.T + bih
        gh = h @ whh.T + bhh
        r = jax.nn.sigmoid(gi[:, :H] + gh[:, :H])
        z = jax.nn.sigmoid(gi[:, H:2 * H] + gh[:, H:2 * H])
        n = jnp.tanh(gi[:, 2 * H:] + r * gh[:, 2 * H:])
        h_new = (1.0 - z) * n + z * h
        return h_new, h_new

    h_fin, out_tbh = jax.lax.scan(step, h, jnp.transpose(emb, (1, 0, 2)))
    output = jnp.transpose(out_tbh, (1, 0, 2))
    logits = output @ params["w_out"].T + params["b_out"]
    return output, jax.nn.softmax(logits, axis=-1), h_fin[None]


def make_params(key, dict_size, embedding_size, hidden_size):
    ks = jax.random.split(key, 7)
    s = 0.1
    E, H, V = embedding_size, hidden_size, dict_size
    return {
        "embedding": jax.random.normal(ks[0], (V, E), jnp.float32) * s,
        "w_ih": jax.random.normal(ks[1], (3 * H, E), jnp.float32) * s,
        "w_hh": jax.random.normal(ks[2], (3 * H, H), jnp.float32) * s,
        "b_ih": jax.random.normal(ks[3], (3 * H,), jnp.float32) * s,
        "b_hh": jax.random.normal(ks[4], (3 * H,), jnp.float32) * s,
        "w_out": jax.random.normal(ks[5], (V, H), jnp.float32) * s,
        "b_out": jax.random.normal(ks[6], (V,), jnp.float32) * s,
    }


if __name__ == "__main__":
    key = jax.random.PRNGKey(0)
    ks = jax.random.split(key, 6)

    # --- Test 1: fused softmax path, single-chunk recurrence ---------------
    B, T = 2, 8
    dict_size, embedding_size, hidden_size = 16, 32, 32
    tokens = jax.random.randint(ks[0], (B, T, 1), 0, dict_size, jnp.int32)
    hidden = jax.random.normal(ks[1], (1, B, hidden_size), jnp.float32)
    params = make_params(ks[2], dict_size, embedding_size, hidden_size)
    prep = prepare_params(params)

    out, sm, h_state = decoder_forward(tokens, hidden, prep)
    jax.block_until_ready((out, sm, h_state))

    ref_out, ref_sm, ref_h = decoder_reference(tokens, hidden, params)
    assert out.shape == (B, T, hidden_size)
    assert sm.shape == (B, T, dict_size)
    assert h_state.shape == (1, B, hidden_size)
    # bf16 MXU operands (f32 accumulation) -> slightly looser tolerances.
    assert jnp.allclose(out, ref_out, atol=1e-2, rtol=1e-2)
    assert jnp.allclose(h_state, ref_h, atol=1e-2, rtol=1e-2)
    assert jnp.allclose(sm, ref_sm, atol=1e-2, rtol=1e-2)

    # --- Test 2: T-chunked recurrence with ragged tail + V-tiled softmax ---
    B2, T2 = 2, 5
    dict2, emb2, hid2 = 300, 32, 32
    tokens2 = jax.random.randint(ks[3], (B2, T2, 1), 0, dict2, jnp.int32)
    hidden2 = jax.random.normal(ks[4], (1, B2, hid2), jnp.float32)
    params2 = make_params(ks[5], dict2, emb2, hid2)
    prep2 = prepare_params(params2)

    out2, sm2, h2 = decoder_forward(tokens2, hidden2, prep2,
                                    t_chunk=2, row_tile=8, vocab_tile=128)
    jax.block_until_ready((out2, sm2, h2))
    r_out2, r_sm2, r_h2 = decoder_reference(tokens2, hidden2, params2)
    assert out2.shape == (B2, T2, hid2)
    assert sm2.shape == (B2, T2, dict2)
    assert jnp.allclose(out2, r_out2, atol=1e-2, rtol=1e-2)
    assert jnp.allclose(h2, r_h2, atol=1e-2, rtol=1e-2)
    assert jnp.allclose(sm2, r_sm2, atol=1e-2, rtol=1e-2)

    print("KERNEL_OK")
</pallas_src>

<mosaic_0001>
module attributes {stable_mosaic.version = 11 : i64} {
  func.func @kernel(%arg0: i32, %arg1: memref<8x8x384xf32, #tpu.memory_space<vmem>>, %arg2: memref<8x128xf32, #tpu.memory_space<vmem>>, %arg3: memref<128x384xbf16, #tpu.memory_space<vmem>>, %arg4: memref<1x384xf32, #tpu.memory_space<vmem>>, %arg5: memref<8x8x128xf32, #tpu.memory_space<vmem>>, %arg6: memref<8x128xf32, #tpu.memory_space<vmem>>, %arg7: memref<8x128xf32, #tpu.memory_space<vmem>>) attributes {dimension_semantics = [#tpu.dimension_semantics<arbitrary>], iteration_bounds = array<i64: 1>, scalar_prefetch = 0 : i64, scratch_operands = 1 : i64, tpu.core_type = #tpu.core_type<tc>, window_params = [{transform_indices = @transform_0, window_bounds = array<i64: 8, 8, 384>}, {pipeline_mode = #tpu.pipeline_mode<synchronous>, transform_indices = @transform_1, window_bounds = array<i64: 8, 128>}, {pipeline_mode = #tpu.pipeline_mode<synchronous>, transform_indices = @transform_2, window_bounds = array<i64: 128, 384>}, {pipeline_mode = #tpu.pipeline_mode<synchronous>, transform_indices = @transform_3, window_bounds = array<i64: 1, 384>}, {transform_indices = @transform_4, window_bounds = array<i64: 8, 8, 128>}, {pipeline_mode = #tpu.pipeline_mode<synchronous>, transform_indices = @transform_5, window_bounds = array<i64: 8, 128>}]} {
    %c0_i32 = arith.constant 0 : i32
    %0 = arith.cmpi eq, %arg0, %c0_i32 : i32
    %1 = arith.extui %0 : i1 to i32
    %c0_i32_0 = arith.constant 0 : i32
    %2 = arith.cmpi ne, %1, %c0_i32_0 : i32
    scf.if %2 {
      %c0_88 = arith.constant 0 : index
      %c0_89 = arith.constant 0 : index
      %313 = vector.load %arg2[%c0_88, %c0_89] : memref<8x128xf32, #tpu.memory_space<vmem>>, vector<8x128xf32>
      %c0_90 = arith.constant 0 : index
      %c0_91 = arith.constant 0 : index
      %314 = vector.load %arg7[%c0_90, %c0_91] : memref<8x128xf32, #tpu.memory_space<vmem>>, vector<8x128xf32>
      tpu.vector_store %arg7[%c0_90, %c0_91], %313 {strides = array<i32>} : memref<8x128xf32, #tpu.memory_space<vmem>>, vector<8x128xf32>,
    } else {
    }
    %c0 = arith.constant 0 : index
    %c0_1 = arith.constant 0 : index
    %3 = vector.load %arg4[%c0, %c0_1] : memref<1x384xf32, #tpu.memory_space<vmem>>, vector<1x384xf32>
    %c0_2 = arith.constant 0 : index
    %c0_3 = arith.constant 0 : index
    %4 = vector.load %arg7[%c0_2, %c0_3] : memref<8x128xf32, #tpu.memory_space<vmem>>, vector<8x128xf32>
    %c0_i32_4 = arith.constant 0 : i32
    %5 = arith.index_cast %c0_i32_4 : i32 to index
    %c0_5 = arith.constant 0 : index
    %c0_6 = arith.constant 0 : index
    %6 = vector.load %arg1[%5, %c0_5, %c0_6] : memref<8x8x384xf32, #tpu.memory_space<vmem>>, vector<1x8x384xf32>
    %7 = vector.shape_cast %6 : vector<1x8x384xf32> to vector<8x384xf32>
    %8 = arith.truncf %4 : vector<8x128xf32> to vector<8x128xbf16>
    %c0_7 = arith.constant 0 : index
    %c0_8 = arith.constant 0 : index
    %9 = vector.load %arg3[%c0_7, %c0_8] : memref<128x384xbf16, #tpu.memory_space<vmem>>, vector<128x384xbf16>
    %cst = arith.constant dense<0.000000e+00> : vector<8x384xf32>
    %10 = tpu.matmul %8, %9, %cst {dimension_numbers = #tpu.dot_dimension_numbers<[1], [0], [0], [1], [0, 0, 1, 1], [], []>} : vector<8x128xbf16>, vector<128x384xbf16>, vector<8x384xf32> -> vector<8x384xf32>
    %11 = vector.broadcast %3 : vector<1x384xf32> to vector<8x384xf32>
    %12 = arith.addf %10, %11 : vector<8x384xf32>
    %13 = vector.extract_strided_slice %7 {offsets = [0, 0], sizes = [8, 128], strides = [1, 1]} : vector<8x384xf32> to vector<8x128xf32>
    %14 = vector.extract_strided_slice %12 {offsets = [0, 0], sizes = [8, 128], strides = [1, 1]} : vector<8x384xf32> to vector<8x128xf32>
    %15 = arith.addf %13, %14 : vector<8x128xf32>
    %16 = arith.negf %15 : vector<8x128xf32>
    %17 = math.exp %16 : vector<8x128xf32>
    %cst_9 = arith.constant 1.000000e+00 : f32
    %18 = vector.broadcast %cst_9 : f32 to vector<8x128xf32>
    %19 = arith.addf %18, %17 : vector<8x128xf32>
    %20 = arith.divf %18, %19 : vector<8x128xf32>
    %21 = vector.extract_strided_slice %7 {offsets = [0, 128], sizes = [8, 128], strides = [1, 1]} : vector<8x384xf32> to vector<8x128xf32>
    %22 = vector.extract_strided_slice %12 {offsets = [0, 128], sizes = [8, 128], strides = [1, 1]} : vector<8x384xf32> to vector<8x128xf32>
    %23 = arith.addf %21, %22 : vector<8x128xf32>
    %24 = arith.negf %23 : vector<8x128xf32>
    %25 = math.exp %24 : vector<8x128xf32>
    %cst_10 = arith.constant 1.000000e+00 : f32
    %26 = vector.broadcast %cst_10 : f32 to vector<8x128xf32>
    %27 = arith.addf %26, %25 : vector<8x128xf32>
    %28 = arith.divf %26, %27 : vector<8x128xf32>
    %29 = vector.extract_strided_slice %7 {offsets = [0, 256], sizes = [8, 128], strides = [1, 1]} : vector<8x384xf32> to vector<8x128xf32>
    %30 = vector.extract_strided_slice %12 {offsets = [0, 256], sizes = [8, 128], strides = [1, 1]} : vector<8x384xf32> to vector<8x128xf32>
    %31 = arith.mulf %20, %30 : vector<8x128xf32>
    %32 = arith.addf %29, %31 : vector<8x128xf32>
    %33 = math.tanh %32 : vector<8x128xf32>
    %cst_11 = arith.constant 1.000000e+00 : f32
    %34 = vector.broadcast %cst_11 : f32 to vector<8x128xf32>
    %35 = arith.subf %34, %28 : vector<8x128xf32>
    %36 = arith.mulf %35, %33 : vector<8x128xf32>
    %37 = arith.mulf %28, %4 : vector<8x128xf32>
    %38 = arith.addf %36, %37 : vector<8x128xf32>
    %39 = arith.index_cast %c0_i32_4 : i32 to index
    %c0_12 = arith.constant 0 : index
    %c0_13 = arith.constant 0 : index
    %40 = vector.load %arg5[%39, %c0_12, %c0_13] : memref<8x8x128xf32, #tpu.memory_space<vmem>>, vector<1x8x128xf32>
    %41 = vector.shape_cast %40 : vector<1x8x128xf32> to vector<8x128xf32>
    %42 = vector.shape_cast %38 : vector<8x128xf32> to vector<1x8x128xf32>
    tpu.vector_store %arg5[%39, %c0_12, %c0_13], %42 {strides = array<i32>} : memref<8x8x128xf32, #tpu.memory_space<vmem>>, vector<1x8x128xf32>,
    %c1_i32 = arith.constant 1 : i32
    %43 = arith.index_cast %c1_i32 : i32 to index
    %c0_14 = arith.constant 0 : index
    %c0_15 = arith.constant 0 : index
    %44 = vector.load %arg1[%43, %c0_14, %c0_15] : memref<8x8x384xf32, #tpu.memory_space<vmem>>, vector<1x8x384xf32>
    %45 = vector.shape_cast %44 : vector<1x8x384xf32> to vector<8x384xf32>
    %46 = arith.truncf %38 : vector<8x128xf32> to vector<8x128xbf16>
    %c0_16 = arith.constant 0 : index
    %c0_17 = arith.constant 0 : index
    %47 = vector.load %arg3[%c0_16, %c0_17] : memref<128x384xbf16, #tpu.memory_space<vmem>>, vector<128x384xbf16>
    %cst_18 = arith.constant dense<0.000000e+00> : vector<8x384xf32>
    %48 = tpu.matmul %46, %47, %cst_18 {dimension_numbers = #tpu.dot_dimension_numbers<[1], [0], [0], [1], [0, 0, 1, 1], [], []>} : vector<8x128xbf16>, vector<128x384xbf16>, vector<8x384xf32> -> vector<8x384xf32>
    %49 = vector.broadcast %3 : vector<1x384xf32> to vector<8x384xf32>
    %50 = arith.addf %48, %49 : vector<8x384xf32>
    %51 = vector.extract_strided_slice %45 {offsets = [0, 0], sizes = [8, 128], strides = [1, 1]} : vector<8x384xf32> to vector<8x128xf32>
    %52 = vector.extract_strided_slice %50 {offsets = [0, 0], sizes = [8, 128], strides = [1, 1]} : vector<8x384xf32> to vector<8x128xf32>
    %53 = arith.addf %51, %52 : vector<8x128xf32>
    %54 = arith.negf %53 : vector<8x128xf32>
    %55 = math.exp %54 : vector<8x128xf32>
    %cst_19 = arith.constant 1.000000e+00 : f32
    %56 = vector.broadcast %cst_19 : f32 to vector<8x128xf32>
    %57 = arith.addf %56, %55 : vector<8x128xf32>
    %58 = arith.divf %56, %57 : vector<8x128xf32>
    %59 = vector.extract_strided_slice %45 {offsets = [0, 128], sizes = [8, 128], strides = [1, 1]} : vector<8x384xf32> to vector<8x128xf32>
    %60 = vector.extract_strided_slice %50 {offsets = [0, 128], sizes = [8, 128], strides = [1, 1]} : vector<8x384xf32> to vector<8x128xf32>
    %61 = arith.addf %59, %60 : vector<8x128xf32>
    %62 = arith.negf %61 : vector<8x128xf32>
    %63 = math.exp %62 : vector<8x128xf32>
    %cst_20 = arith.constant 1.000000e+00 : f32
    %64 = vector.broadcast %cst_20 : f32 to vector<8x128xf32>
    %65 = arith.addf %64, %63 : vector<8x128xf32>
    %66 = arith.divf %64, %65 : vector<8x128xf32>
    %67 = vector.extract_strided_slice %45 {offsets = [0, 256], sizes = [8, 128], strides = [1, 1]} : vector<8x384xf32> to vector<8x128xf32>
    %68 = vector.extract_strided_slice %50 {offsets = [0, 256], sizes = [8, 128], strides = [1, 1]} : vector<8x384xf32> to vector<8x128xf32>
    %69 = arith.mulf %58, %68 : vector<8x128xf32>
    %70 = arith.addf %67, %69 : vector<8x128xf32>
    %71 = math.tanh %70 : vector<8x128xf32>
    %cst_21 = arith.constant 1.000000e+00 : f32
    %72 = vector.broadcast %cst_21 : f32 to vector<8x128xf32>
    %73 = arith.subf %72, %66 : vector<8x128xf32>
    %74 = arith.mulf %73, %71 : vector<8x128xf32>
    %75 = arith.mulf %66, %38 : vector<8x128xf32>
    %76 = arith.addf %74, %75 : vector<8x128xf32>
    %77 = arith.index_cast %c1_i32 : i32 to index
    %c0_22 = arith.constant 0 : index
    %c0_23 = arith.constant 0 : index
    %78 = vector.load %arg5[%77, %c0_22, %c0_23] : memref<8x8x128xf32, #tpu.memory_space<vmem>>, vector<1x8x128xf32>
    %79 = vector.shape_cast %78 : vector<1x8x128xf32> to vector<8x128xf32>
    %80 = vector.shape_cast %76 : vector<8x128xf32> to vector<1x8x128xf32>
    tpu.vector_store %arg5[%77, %c0_22, %c0_23], %80 {strides = array<i32>} : memref<8x8x128xf32, #tpu.memory_space<vmem>>, vector<1x8x128xf32>,
    %c2_i32 = arith.constant 2 : i32
    %81 = arith.index_cast %c2_i32 : i32 to index
    %c0_24 = arith.constant 0 : index
    %c0_25 = arith.constant 0 : index
    %82 = vector.load %arg1[%81, %c0_24, %c0_25] : memref<8x8x384xf32, #tpu.memory_space<vmem>>, vector<1x8x384xf32>
    %83 = vector.shape_cast %82 : vector<1x8x384xf32> to vector<8x384xf32>
    %84 = arith.truncf %76 : vector<8x128xf32> to vector<8x128xbf16>
    %c0_26 = arith.constant 0 : index
    %c0_27 = arith.constant 0 : index
    %85 = vector.load %arg3[%c0_26, %c0_27] : memref<128x384xbf16, #tpu.memory_space<vmem>>, vector<128x384xbf16>
    %cst_28 = arith.constant dense<0.000000e+00> : vector<8x384xf32>
    %86 = tpu.matmul %84, %85, %cst_28 {dimension_numbers = #tpu.dot_dimension_numbers<[1], [0], [0], [1], [0, 0, 1, 1], [], []>} : vector<8x128xbf16>, vector<128x384xbf16>, vector<8x384xf32> -> vector<8x384xf32>
    %87 = vector.broadcast %3 : vector<1x384xf32> to vector<8x384xf32>
    %88 = arith.addf %86, %87 : vector<8x384xf32>
    %89 = vector.extract_strided_slice %83 {offsets = [0, 0], sizes = [8, 128], strides = [1, 1]} : vector<8x384xf32> to vector<8x128xf32>
    %90 = vector.extract_strided_slice %88 {offsets = [0, 0], sizes = [8, 128], strides = [1, 1]} : vector<8x384xf32> to vector<8x128xf32>
    %91 = arith.addf %89, %90 : vector<8x128xf32>
    %92 = arith.negf %91 : vector<8x128xf32>
    %93 = math.exp %92 : vector<8x128xf32>
    %cst_29 = arith.constant 1.000000e+00 : f32
    %94 = vector.broadcast %cst_29 : f32 to vector<8x128xf32>
    %95 = arith.addf %94, %93 : vector<8x128xf32>
    %96 = arith.divf %94, %95 : vector<8x128xf32>
    %97 = vector.extract_strided_slice %83 {offsets = [0, 128], sizes = [8, 128], strides = [1, 1]} : vector<8x384xf32> to vector<8x128xf32>
    %98 = vector.extract_strided_slice %88 {offsets = [0, 128], sizes = [8, 128], strides = [1, 1]} : vector<8x384xf32> to vector<8x128xf32>
    %99 = arith.addf %97, %98 : vector<8x128xf32>
    %100 = arith.negf %99 : vector<8x128xf32>
    %101 = math.exp %100 : vector<8x128xf32>
    %cst_30 = arith.constant 1.000000e+00 : f32
    %102 = vector.broadcast %cst_30 : f32 to vector<8x128xf32>
    %103 = arith.addf %102, %101 : vector<8x128xf32>
    %104 = arith.divf %102, %103 : vector<8x128xf32>
    %105 = vector.extract_strided_slice %83 {offsets = [0, 256], sizes = [8, 128], strides = [1, 1]} : vector<8x384xf32> to vector<8x128xf32>
    %106 = vector.extract_strided_slice %88 {offsets = [0, 256], sizes = [8, 128], strides = [1, 1]} : vector<8x384xf32> to vector<8x128xf32>
    %107 = arith.mulf %96, %106 : vector<8x128xf32>
    %108 = arith.addf %105, %107 : vector<8x128xf32>
    %109 = math.tanh %108 : vector<8x128xf32>
    %cst_31 = arith.constant 1.000000e+00 : f32
    %110 = vector.broadcast %cst_31 : f32 to vector<8x128xf32>
    %111 = arith.subf %110, %104 : vector<8x128xf32>
    %112 = arith.mulf %111, %109 : vector<8x128xf32>
    %113 = arith.mulf %104, %76 : vector<8x128xf32>
    %114 = arith.addf %112, %113 : vector<8x128xf32>
    %115 = arith.index_cast %c2_i32 : i32 to index
    %c0_32 = arith.constant 0 : index
    %c0_33 = arith.constant 0 : index
    %116 = vector.load %arg5[%115, %c0_32, %c0_33] : memref<8x8x128xf32, #tpu.memory_space<vmem>>, vector<1x8x128xf32>
    %117 = vector.shape_cast %116 : vector<1x8x128xf32> to vector<8x128xf32>
    %118 = vector.shape_cast %114 : vector<8x128xf32> to vector<1x8x128xf32>
    tpu.vector_store %arg5[%115, %c0_32, %c0_33], %118 {strides = array<i32>} : memref<8x8x128xf32, #tpu.memory_space<vmem>>, vector<1x8x128xf32>,
    %c3_i32 = arith.constant 3 : i32
    %119 = arith.index_cast %c3_i32 : i32 to index
    %c0_34 = arith.constant 0 : index
    %c0_35 = arith.constant 0 : index
    %120 = vector.load %arg1[%119, %c0_34, %c0_35] : memref<8x8x384xf32, #tpu.memory_space<vmem>>, vector<1x8x384xf32>
    %121 = vector.shape_cast %120 : vector<1x8x384xf32> to vector<8x384xf32>
    %122 = arith.truncf %114 : vector<8x128xf32> to vector<8x128xbf16>
    %c0_36 = arith.constant 0 : index
    %c0_37 = arith.constant 0 : index
    %123 = vector.load %arg3[%c0_36, %c0_37] : memref<128x384xbf16, #tpu.memory_space<vmem>>, vector<128x384xbf16>
    %cst_38 = arith.constant dense<0.000000e+00> : vector<8x384xf32>
    %124 = tpu.matmul %122, %123, %cst_38 {dimension_numbers = #tpu.dot_dimension_numbers<[1], [0], [0], [1], [0, 0, 1, 1], [], []>} : vector<8x128xbf16>, vector<128x384xbf16>, vector<8x384xf32> -> vector<8x384xf32>
    %125 = vector.broadcast %3 : vector<1x384xf32> to vector<8x384xf32>
    %126 = arith.addf %124, %125 : vector<8x384xf32>
    %127 = vector.extract_strided_slice %121 {offsets = [0, 0], sizes = [8, 128], strides = [1, 1]} : vector<8x384xf32> to vector<8x128xf32>
    %128 = vector.extract_strided_slice %126 {offsets = [0, 0], sizes = [8, 128], strides = [1, 1]} : vector<8x384xf32> to vector<8x128xf32>
    %129 = arith.addf %127, %128 : vector<8x128xf32>
    %130 = arith.negf %129 : vector<8x128xf32>
    %131 = math.exp %130 : vector<8x128xf32>
    %cst_39 = arith.constant 1.000000e+00 : f32
    %132 = vector.broadcast %cst_39 : f32 to vector<8x128xf32>
    %133 = arith.addf %132, %131 : vector<8x128xf32>
    %134 = arith.divf %132, %133 : vector<8x128xf32>
    %135 = vector.extract_strided_slice %121 {offsets = [0, 128], sizes = [8, 128], strides = [1, 1]} : vector<8x384xf32> to vector<8x128xf32>
    %136 = vector.extract_strided_slice %126 {offsets = [0, 128], sizes = [8, 128], strides = [1, 1]} : vector<8x384xf32> to vector<8x128xf32>
    %137 = arith.addf %135, %136 : vector<8x128xf32>
    %138 = arith.negf %137 : vector<8x128xf32>
    %139 = math.exp %138 : vector<8x128xf32>
    %cst_40 = arith.constant 1.000000e+00 : f32
    %140 = vector.broadcast %cst_40 : f32 to vector<8x128xf32>
    %141 = arith.addf %140, %139 : vector<8x128xf32>
    %142 = arith.divf %140, %141 : vector<8x128xf32>
    %143 = vector.extract_strided_slice %121 {offsets = [0, 256], sizes = [8, 128], strides = [1, 1]} : vector<8x384xf32> to vector<8x128xf32>
    %144 = vector.extract_strided_slice %126 {offsets = [0, 256], sizes = [8, 128], strides = [1, 1]} : vector<8x384xf32> to vector<8x128xf32>
    %145 = arith.mulf %134, %144 : vector<8x128xf32>
    %146 = arith.addf %143, %145 : vector<8x128xf32>
    %147 = math.tanh %146 : vector<8x128xf32>
    %cst_41 = arith.constant 1.000000e+00 : f32
    %148 = vector.broadcast %cst_41 : f32 to vector<8x128xf32>
    %149 = arith.subf %148, %142 : vector<8x128xf32>
    %150 = arith.mulf %149, %147 : vector<8x128xf32>
    %151 = arith.mulf %142, %114 : vector<8x128xf32>
    %152 = arith.addf %150, %151 : vector<8x128xf32>
    %153 = arith.index_cast %c3_i32 : i32 to index
    %c0_42 = arith.constant 0 : index
    %c0_43 = arith.constant 0 : index
    %154 = vector.load %arg5[%153, %c0_42, %c0_43] : memref<8x8x128xf32, #tpu.memory_space<vmem>>, vector<1x8x128xf32>
    %155 = vector.shape_cast %154 : vector<1x8x128xf32> to vector<8x128xf32>
    %156 = vector.shape_cast %152 : vector<8x128xf32> to vector<1x8x128xf32>
    tpu.vector_store %arg5[%153, %c0_42, %c0_43], %156 {strides = array<i32>} : memref<8x8x128xf32, #tpu.memory_space<vmem>>, vector<1x8x128xf32>,
    %c4_i32 = arith.constant 4 : i32
    %157 = arith.index_cast %c4_i32 : i32 to index
    %c0_44 = arith.constant 0 : index
    %c0_45 = arith.constant 0 : index
    %158 = vector.load %arg1[%157, %c0_44, %c0_45] : memref<8x8x384xf32, #tpu.memory_space<vmem>>, vector<1x8x384xf32>
    %159 = vector.shape_cast %158 : vector<1x8x384xf32> to vector<8x384xf32>
    %160 = arith.truncf %152 : vector<8x128xf32> to vector<8x128xbf16>
    %c0_46 = arith.constant 0 : index
    %c0_47 = arith.constant 0 : index
    %161 = vector.load %arg3[%c0_46, %c0_47] : memref<128x384xbf16, #tpu.memory_space<vmem>>, vector<128x384xbf16>
    %cst_48 = arith.constant dense<0.000000e+00> : vector<8x384xf32>
    %162 = tpu.matmul %160, %161, %cst_48 {dimension_numbers = #tpu.dot_dimension_numbers<[1], [0], [0], [1], [0, 0, 1, 1], [], []>} : vector<8x128xbf16>, vector<128x384xbf16>, vector<8x384xf32> -> vector<8x384xf32>
    %163 = vector.broadcast %3 : vector<1x384xf32> to vector<8x384xf32>
    %164 = arith.addf %162, %163 : vector<8x384xf32>
    %165 = vector.extract_strided_slice %159 {offsets = [0, 0], sizes = [8, 128], strides = [1, 1]} : vector<8x384xf32> to vector<8x128xf32>
    %166 = vector.extract_strided_slice %164 {offsets = [0, 0], sizes = [8, 128], strides = [1, 1]} : vector<8x384xf32> to vector<8x128xf32>
    %167 = arith.addf %165, %166 : vector<8x128xf32>
    %168 = arith.negf %167 : vector<8x128xf32>
    %169 = math.exp %168 : vector<8x128xf32>
    %cst_49 = arith.constant 1.000000e+00 : f32
    %170 = vector.broadcast %cst_49 : f32 to vector<8x128xf32>
    %171 = arith.addf %170, %169 : vector<8x128xf32>
    %172 = arith.divf %170, %171 : vector<8x128xf32>
    %173 = vector.extract_strided_slice %159 {offsets = [0, 128], sizes = [8, 128], strides = [1, 1]} : vector<8x384xf32> to vector<8x128xf32>
    %174 = vector.extract_strided_slice %164 {offsets = [0, 128], sizes = [8, 128], strides = [1, 1]} : vector<8x384xf32> to vector<8x128xf32>
    %175 = arith.addf %173, %174 : vector<8x128xf32>
    %176 = arith.negf %175 : vector<8x128xf32>
    %177 = math.exp %176 : vector<8x128xf32>
    %cst_50 = arith.constant 1.000000e+00 : f32
    %178 = vector.broadcast %cst_50 : f32 to vector<8x128xf32>
    %179 = arith.addf %178, %177 : vector<8x128xf32>
    %180 = arith.divf %178, %179 : vector<8x128xf32>
    %181 = vector.extract_strided_slice %159 {offsets = [0, 256], sizes = [8, 128], strides = [1, 1]} : vector<8x384xf32> to vector<8x128xf32>
    %182 = vector.extract_strided_slice %164 {offsets = [0, 256], sizes = [8, 128], strides = [1, 1]} : vector<8x384xf32> to vector<8x128xf32>
    %183 = arith.mulf %172, %182 : vector<8x128xf32>
    %184 = arith.addf %181, %183 : vector<8x128xf32>
    %185 = math.tanh %184 : vector<8x128xf32>
    %cst_51 = arith.constant 1.000000e+00 : f32
    %186 = vector.broadcast %cst_51 : f32 to vector<8x128xf32>
    %187 = arith.subf %186, %180 : vector<8x128xf32>
    %188 = arith.mulf %187, %185 : vector<8x128xf32>
    %189 = arith.mulf %180, %152 : vector<8x128xf32>
    %190 = arith.addf %188, %189 : vector<8x128xf32>
    %191 = arith.index_cast %c4_i32 : i32 to index
    %c0_52 = arith.constant 0 : index
    %c0_53 = arith.constant 0 : index
    %192 = vector.load %arg5[%191, %c0_52, %c0_53] : memref<8x8x128xf32, #tpu.memory_space<vmem>>, vector<1x8x128xf32>
    %193 = vector.shape_cast %192 : vector<1x8x128xf32> to vector<8x128xf32>
    %194 = vector.shape_cast %190 : vector<8x128xf32> to vector<1x8x128xf32>
    tpu.vector_store %arg5[%191, %c0_52, %c0_53], %194 {strides = array<i32>} : memref<8x8x128xf32, #tpu.memory_space<vmem>>, vector<1x8x128xf32>,
    %c5_i32 = arith.constant 5 : i32
    %195 = arith.index_cast %c5_i32 : i32 to index
    %c0_54 = arith.constant 0 : index
    %c0_55 = arith.constant 0 : index
    %196 = vector.load %arg1[%195, %c0_54, %c0_55] : memref<8x8x384xf32, #tpu.memory_space<vmem>>, vector<1x8x384xf32>
    %197 = vector.shape_cast %196 : vector<1x8x384xf32> to vector<8x384xf32>
    %198 = arith.truncf %190 : vector<8x128xf32> to vector<8x128xbf16>
    %c0_56 = arith.constant 0 : index
    %c0_57 = arith.constant 0 : index
    %199 = vector.load %arg3[%c0_56, %c0_57] : memref<128x384xbf16, #tpu.memory_space<vmem>>, vector<128x384xbf16>
    %cst_58 = arith.constant dense<0.000000e+00> : vector<8x384xf32>
    %200 = tpu.matmul %198, %199, %cst_58 {dimension_numbers = #tpu.dot_dimension_numbers<[1], [0], [0], [1], [0, 0, 1, 1], [], []>} : vector<8x128xbf16>, vector<128x384xbf16>, vector<8x384xf32> -> vector<8x384xf32>
    %201 = vector.broadcast %3 : vector<1x384xf32> to vector<8x384xf32>
    %202 = arith.addf %200, %201 : vector<8x384xf32>
    %203 = vector.extract_strided_slice %197 {offsets = [0, 0], sizes = [8, 128], strides = [1, 1]} : vector<8x384xf32> to vector<8x128xf32>
    %204 = vector.extract_strided_slice %202 {offsets = [0, 0], sizes = [8, 128], strides = [1, 1]} : vector<8x384xf32> to vector<8x128xf32>
    %205 = arith.addf %203, %204 : vector<8x128xf32>
    %206 = arith.negf %205 : vector<8x128xf32>
    %207 = math.exp %206 : vector<8x128xf32>
    %cst_59 = arith.constant 1.000000e+00 : f32
    %208 = vector.broadcast %cst_59 : f32 to vector<8x128xf32>
    %209 = arith.addf %208, %207 : vector<8x128xf32>
    %210 = arith.divf %208, %209 : vector<8x128xf32>
    %211 = vector.extract_strided_slice %197 {offsets = [0, 128], sizes = [8, 128], strides = [1, 1]} : vector<8x384xf32> to vector<8x128xf32>
    %212 = vector.extract_strided_slice %202 {offsets = [0, 128], sizes = [8, 128], strides = [1, 1]} : vector<8x384xf32> to vector<8x128xf32>
    %213 = arith.addf %211, %212 : vector<8x128xf32>
    %214 = arith.negf %213 : vector<8x128xf32>
    %215 = math.exp %214 : vector<8x128xf32>
    %cst_60 = arith.constant 1.000000e+00 : f32
    %216 = vector.broadcast %cst_60 : f32 to vector<8x128xf32>
    %217 = arith.addf %216, %215 : vector<8x128xf32>
    %218 = arith.divf %216, %217 : vector<8x128xf32>
    %219 = vector.extract_strided_slice %197 {offsets = [0, 256], sizes = [8, 128], strides = [1, 1]} : vector<8x384xf32> to vector<8x128xf32>
    %220 = vector.extract_strided_slice %202 {offsets = [0, 256], sizes = [8, 128], strides = [1, 1]} : vector<8x384xf32> to vector<8x128xf32>
    %221 = arith.mulf %210, %220 : vector<8x128xf32>
    %222 = arith.addf %219, %221 : vector<8x128xf32>
    %223 = math.tanh %222 : vector<8x128xf32>
    %cst_61 = arith.constant 1.000000e+00 : f32
    %224 = vector.broadcast %cst_61 : f32 to vector<8x128xf32>
    %225 = arith.subf %224, %218 : vector<8x128xf32>
    %226 = arith.mulf %225, %223 : vector<8x128xf32>
    %227 = arith.mulf %218, %190 : vector<8x128xf32>
    %228 = arith.addf %226, %227 : vector<8x128xf32>
    %229 = arith.index_cast %c5_i32 : i32 to index
    %c0_62 = arith.constant 0 : index
    %c0_63 = arith.constant 0 : index
    %230 = vector.load %arg5[%229, %c0_62, %c0_63] : memref<8x8x128xf32, #tpu.memory_space<vmem>>, vector<1x8x128xf32>
    %231 = vector.shape_cast %230 : vector<1x8x128xf32> to vector<8x128xf32>
    %232 = vector.shape_cast %228 : vector<8x128xf32> to vector<1x8x128xf32>
    tpu.vector_store %arg5[%229, %c0_62, %c0_63], %232 {strides = array<i32>} : memref<8x8x128xf32, #tpu.memory_space<vmem>>, vector<1x8x128xf32>,
    %c6_i32 = arith.constant 6 : i32
    %233 = arith.index_cast %c6_i32 : i32 to index
    %c0_64 = arith.constant 0 : index
    %c0_65 = arith.constant 0 : index
    %234 = vector.load %arg1[%233, %c0_64, %c0_65] : memref<8x8x384xf32, #tpu.memory_space<vmem>>, vector<1x8x384xf32>
    %235 = vector.shape_cast %234 : vector<1x8x384xf32> to vector<8x384xf32>
    %236 = arith.truncf %228 : vector<8x128xf32> to vector<8x128xbf16>
    %c0_66 = arith.constant 0 : index
    %c0_67 = arith.constant 0 : index
    %237 = vector.load %arg3[%c0_66, %c0_67] : memref<128x384xbf16, #tpu.memory_space<vmem>>, vector<128x384xbf16>
    %cst_68 = arith.constant dense<0.000000e+00> : vector<8x384xf32>
    %238 = tpu.matmul %236, %237, %cst_68 {dimension_numbers = #tpu.dot_dimension_numbers<[1], [0], [0], [1], [0, 0, 1, 1], [], []>} : vector<8x128xbf16>, vector<128x384xbf16>, vector<8x384xf32> -> vector<8x384xf32>
    %239 = vector.broadcast %3 : vector<1x384xf32> to vector<8x384xf32>
    %240 = arith.addf %238, %239 : vector<8x384xf32>
    %241 = vector.extract_strided_slice %235 {offsets = [0, 0], sizes = [8, 128], strides = [1, 1]} : vector<8x384xf32> to vector<8x128xf32>
    %242 = vector.extract_strided_slice %240 {offsets = [0, 0], sizes = [8, 128], strides = [1, 1]} : vector<8x384xf32> to vector<8x128xf32>
    %243 = arith.addf %241, %242 : vector<8x128xf32>
    %244 = arith.negf %243 : vector<8x128xf32>
    %245 = math.exp %244 : vector<8x128xf32>
    %cst_69 = arith.constant 1.000000e+00 : f32
    %246 = vector.broadcast %cst_69 : f32 to vector<8x128xf32>
    %247 = arith.addf %246, %245 : vector<8x128xf32>
    %248 = arith.divf %246, %247 : vector<8x128xf32>
    %249 = vector.extract_strided_slice %235 {offsets = [0, 128], sizes = [8, 128], strides = [1, 1]} : vector<8x384xf32> to vector<8x128xf32>
    %250 = vector.extract_strided_slice %240 {offsets = [0, 128], sizes = [8, 128], strides = [1, 1]} : vector<8x384xf32> to vector<8x128xf32>
    %251 = arith.addf %249, %250 : vector<8x128xf32>
    %252 = arith.negf %251 : vector<8x128xf32>
    %253 = math.exp %252 : vector<8x128xf32>
    %cst_70 = arith.constant 1.000000e+00 : f32
    %254 = vector.broadcast %cst_70 : f32 to vector<8x128xf32>
    %255 = arith.addf %254, %253 : vector<8x128xf32>
    %256 = arith.divf %254, %255 : vector<8x128xf32>
    %257 = vector.extract_strided_slice %235 {offsets = [0, 256], sizes = [8, 128], strides = [1, 1]} : vector<8x384xf32> to vector<8x128xf32>
    %258 = vector.extract_strided_slice %240 {offsets = [0, 256], sizes = [8, 128], strides = [1, 1]} : vector<8x384xf32> to vector<8x128xf32>
    %259 = arith.mulf %248, %258 : vector<8x128xf32>
    %260 = arith.addf %257, %259 : vector<8x128xf32>
    %261 = math.tanh %260 : vector<8x128xf32>
    %cst_71 = arith.constant 1.000000e+00 : f32
    %262 = vector.broadcast %cst_71 : f32 to vector<8x128xf32>
    %263 = arith.subf %262, %256 : vector<8x128xf32>
    %264 = arith.mulf %263, %261 : vector<8x128xf32>
    %265 = arith.mulf %256, %228 : vector<8x128xf32>
    %266 = arith.addf %264, %265 : vector<8x128xf32>
    %267 = arith.index_cast %c6_i32 : i32 to index
    %c0_72 = arith.constant 0 : index
    %c0_73 = arith.constant 0 : index
    %268 = vector.load %arg5[%267, %c0_72, %c0_73] : memref<8x8x128xf32, #tpu.memory_space<vmem>>, vector<1x8x128xf32>
    %269 = vector.shape_cast %268 : vector<1x8x128xf32> to vector<8x128xf32>
    %270 = vector.shape_cast %266 : vector<8x128xf32> to vector<1x8x128xf32>
    tpu.vector_store %arg5[%267, %c0_72, %c0_73], %270 {strides = array<i32>} : memref<8x8x128xf32, #tpu.memory_space<vmem>>, vector<1x8x128xf32>,
    %c7_i32 = arith.constant 7 : i32
    %271 = arith.index_cast %c7_i32 : i32 to index
    %c0_74 = arith.constant 0 : index
    %c0_75 = arith.constant 0 : index
    %272 = vector.load %arg1[%271, %c0_74, %c0_75] : memref<8x8x384xf32, #tpu.memory_space<vmem>>, vector<1x8x384xf32>
    %273 = vector.shape_cast %272 : vector<1x8x384xf32> to vector<8x384xf32>
    %274 = arith.truncf %266 : vector<8x128xf32> to vector<8x128xbf16>
    %c0_76 = arith.constant 0 : index
    %c0_77 = arith.constant 0 : index
    %275 = vector.load %arg3[%c0_76, %c0_77] : memref<128x384xbf16, #tpu.memory_space<vmem>>, vector<128x384xbf16>
    %cst_78 = arith.constant dense<0.000000e+00> : vector<8x384xf32>
    %276 = tpu.matmul %274, %275, %cst_78 {dimension_numbers = #tpu.dot_dimension_numbers<[1], [0], [0], [1], [0, 0, 1, 1], [], []>} : vector<8x128xbf16>, vector<128x384xbf16>, vector<8x384xf32> -> vector<8x384xf32>
    %277 = vector.broadcast %3 : vector<1x384xf32> to vector<8x384xf32>
    %278 = arith.addf %276, %277 : vector<8x384xf32>
    %279 = vector.extract_strided_slice %273 {offsets = [0, 0], sizes = [8, 128], strides = [1, 1]} : vector<8x384xf32> to vector<8x128xf32>
    %280 = vector.extract_strided_slice %278 {offsets = [0, 0], sizes = [8, 128], strides = [1, 1]} : vector<8x384xf32> to vector<8x128xf32>
    %281 = arith.addf %279, %280 : vector<8x128xf32>
    %282 = arith.negf %281 : vector<8x128xf32>
    %283 = math.exp %282 : vector<8x128xf32>
    %cst_79 = arith.constant 1.000000e+00 : f32
    %284 = vector.broadcast %cst_79 : f32 to vector<8x128xf32>
    %285 = arith.addf %284, %283 : vector<8x128xf32>
    %286 = arith.divf %284, %285 : vector<8x128xf32>
    %287 = vector.extract_strided_slice %273 {offsets = [0, 128], sizes = [8, 128], strides = [1, 1]} : vector<8x384xf32> to vector<8x128xf32>
    %288 = vector.extract_strided_slice %278 {offsets = [0, 128], sizes = [8, 128], strides = [1, 1]} : vector<8x384xf32> to vector<8x128xf32>
    %289 = arith.addf %287, %288 : vector<8x128xf32>
    %290 = arith.negf %289 : vector<8x128xf32>
    %291 = math.exp %290 : vector<8x128xf32>
    %cst_80 = arith.constant 1.000000e+00 : f32
    %292 = vector.broadcast %cst_80 : f32 to vector<8x128xf32>
    %293 = arith.addf %292, %291 : vector<8x128xf32>
    %294 = arith.divf %292, %293 : vector<8x128xf32>
    %295 = vector.extract_strided_slice %273 {offsets = [0, 256], sizes = [8, 128], strides = [1, 1]} : vector<8x384xf32> to vector<8x128xf32>
    %296 = vector.extract_strided_slice %278 {offsets = [0, 256], sizes = [8, 128], strides = [1, 1]} : vector<8x384xf32> to vector<8x128xf32>
    %297 = arith.mulf %286, %296 : vector<8x128xf32>
    %298 = arith.addf %295, %297 : vector<8x128xf32>
    %299 = math.tanh %298 : vector<8x128xf32>
    %cst_81 = arith.constant 1.000000e+00 : f32
    %300 = vector.broadcast %cst_81 : f32 to vector<8x128xf32>
    %301 = arith.subf %300, %294 : vector<8x128xf32>
    %302 = arith.mulf %301, %299 : vector<8x128xf32>
    %303 = arith.mulf %294, %266 : vector<8x128xf32>
    %304 = arith.addf %302, %303 : vector<8x128xf32>
    %305 = arith.index_cast %c7_i32 : i32 to index
    %c0_82 = arith.constant 0 : index
    %c0_83 = arith.constant 0 : index
    %306 = vector.load %arg5[%305, %c0_82, %c0_83] : memref<8x8x128xf32, #tpu.memory_space<vmem>>, vector<1x8x128xf32>
    %307 = vector.shape_cast %306 : vector<1x8x128xf32> to vector<8x128xf32>
    %308 = vector.shape_cast %304 : vector<8x128xf32> to vector<1x8x128xf32>
    tpu.vector_store %arg5[%305, %c0_82, %c0_83], %308 {strides = array<i32>} : memref<8x8x128xf32, #tpu.memory_space<vmem>>, vector<1x8x128xf32>,
    %c8_i32 = arith.constant 8 : i32
    %c0_84 = arith.constant 0 : index
    %c0_85 = arith.constant 0 : index
    %309 = vector.load %arg7[%c0_84, %c0_85] : memref<8x128xf32, #tpu.memory_space<vmem>>, vector<8x128xf32>
    tpu.vector_store %arg7[%c0_84, %c0_85], %304 {strides = array<i32>} : memref<8x128xf32, #tpu.memory_space<vmem>>, vector<8x128xf32>,
    %c0_i32_86 = arith.constant 0 : i32
    %310 = arith.cmpi eq, %arg0, %c0_i32_86 : i32
    %311 = arith.extui %310 : i1 to i32
    %c0_i32_87 = arith.constant 0 : i32
    %312 = arith.cmpi ne, %311, %c0_i32_87 : i32
    scf.if %312 {
      %c0_88 = arith.constant 0 : index
      %c0_89 = arith.constant 0 : index
      %313 = vector.load %arg6[%c0_88, %c0_89] : memref<8x128xf32, #tpu.memory_space<vmem>>, vector<8x128xf32>
      tpu.vector_store %arg6[%c0_88, %c0_89], %304 {strides = array<i32>} : memref<8x128xf32, #tpu.memory_space<vmem>>, vector<8x128xf32>,
    } else {
    }
    return
  }
  func.func @transform_0(%arg0: i32) -> (i32, i32, i32) {
    %c0_i32 = arith.constant 0 : i32
    %c0_i32_0 = arith.constant 0 : i32
    %c0_i32_1 = arith.constant 0 : i32
    return %arg0, %c0_i32, %c0_i32_0 : i32, i32, i32
  }
  func.func @transform_1(%arg0: i32) -> (i32, i32) {
    %c0_i32 = arith.constant 0 : i32
    %c0_i32_0 = arith.constant 0 : i32
    %c0_i32_1 = arith.constant 0 : i32
    return %c0_i32, %c0_i32_0 : i32, i32
  }
  func.func @transform_2(%arg0: i32) -> (i32, i32) {
    %c0_i32 = arith.constant 0 : i32
    %c0_i32_0 = arith.constant 0 : i32
    %c0_i32_1 = arith.constant 0 : i32
    return %c0_i32, %c0_i32_0 : i32, i32
  }
  func.func @transform_3(%arg0: i32) -> (i32, i32) {
    %c0_i32 = arith.constant 0 : i32
    %c0_i32_0 = arith.constant 0 : i32
    %c0_i32_1 = arith.constant 0 : i32
    return %c0_i32, %c0_i32_0 : i32, i32
  }
  func.func @transform_4(%arg0: i32) -> (i32, i32, i32) {
    %c0_i32 = arith.constant 0 : i32
    %c0_i32_0 = arith.constant 0 : i32
    %c0_i32_1 = arith.constant 0 : i32
    return %arg0, %c0_i32, %c0_i32_0 : i32, i32, i32
  }
  func.func @transform_5(%arg0: i32) -> (i32, i32) {
    %c0_i32 = arith.constant 0 : i32
    %c0_i32_0 = arith.constant 0 : i32
    %c0_i32_1 = arith.constant 0 : i32
    return %c0_i32, %c0_i32_0 : i32, i32
  }
}

</mosaic_0001>

<bundles_post_ra>
// kernel: tpu_custom_call.1
= control target key start
LH: loop header
LB: loop body
LE: loop exit
PB: predicated region body
PF: predicated region fallthrough
CT: control target
= control target key end

     0   :  { %11 = vsyncpa [#allocation4], 0  ;;  %s3508_s0 = inlined_call_operand.hbm [shape: f32[8,8,384], index: 0, kind: input, shape index: {}]   ;;  %s3509_s1 = inlined_call_operand.hbm [shape: f32[8,128], index: 1, kind: input, shape index: {}]   ;;  %s3510_s2 = inlined_call_operand.hbm [shape: bf16[128,384], index: 2, kind: input, shape index: {}]   ;;  %s3511_s3 = inlined_call_operand.vmem [shape: f32[1,384], index: 3, kind: input, shape index: {}]   ;;  %s3512_s4 = inlined_call_operand.hbm [shape: f32[8,8,128], index: 4, kind: output, shape index: {0}]   ;;  %s3513_s5 = inlined_call_operand.hbm [shape: f32[8,128], index: 5, kind: output, shape index: {1}]  }
   0x1   :  { %12 = vsyncpa [#allocation7], 0 }
   0x2   :  { %13 = vsyncpa [#allocation5], 0 }
   0x3   :  { %14 = vsyncpa [#allocation11], 0  ;;  %s3036_s18 = smov [#allocation6]   ;;  %s3037_s20 = smov [#allocation3]  }
   0x4   :  { %s33_s19 = sshll.u32 %s3036_s18, 4  ;;  %s20_s21 = sshll.u32 %s3037_s20, 4  ;;  %s34_s19 = int_to_ptr.vmem [resolvable:$true] %s33_s19  ;;  %s3080_s21 = int_to_ptr.vmem [resolvable:$true] %s20_s21 }
   0x5   :  { %s2918_s24 = scalar_lea.hbm %s3509_s1, 128 }
   0x6   :  { %p2919_p0 = scmp.ne.s32.totalorder %s3509_s1, %s2918_s24  ;;  %p2922_p1 = scmp.lt.u32.totalorder %s2918_s24, %s3509_s1 }
   0x8   :  { %p2924_p2 = pnand %p2922_p1, %p2919_p0 }
   0xa   :  { %2927 = shalt.err (!%p2924_p2)
}
   0xb   :  { %s2928_s29 = scalar_lea.vmem %s34_s19, 128  ;;  %p2933_p4 = scmp.lt.s32.totalorder %s34_s19, %s34_s19 }
   0xc   :  { %p2929_p3 = scmp.ne.s32.totalorder %s34_s19, %s2928_s29  ;;  %p2934_p5 = scmp.lt.s32.totalorder %s2928_s29, %s2928_s29 }
   0xe   :  { %p2935_p6 = por %p2934_p5, %p2933_p4 }
  0x10   :  { %p2936_p7 = pnand %p2935_p6, %p2929_p3 }
  0x12   :  { %2939 = shalt.err (!%p2936_p7)
}
  0x13   :  { %36 = dma.hbm_to_vmem [thread:$0]  %s3509_s1, 128, %s34_s19, [#allocation7]  }
  0x14   :  { %s2940_s9 = scalar_lea.hbm %s3508_s0, 3072 }
  0x15   :  { %p2941_p8 = scmp.ne.s32.totalorder %s3508_s0, %s2940_s9  ;;  %p2944_p9 = scmp.lt.u32.totalorder %s2940_s9, %s3508_s0 }
  0x17   :  { %p2946_p10 = pnand %p2944_p9, %p2941_p8 }
  0x19   :  { %2949 = shalt.err (!%p2946_p10)
}
  0x1a   :  { %s2950_s14 = scalar_lea.vmem %s3080_s21, 3072  ;;  %p2955_p12 = scmp.lt.s32.totalorder %s3080_s21, %s3080_s21 }
  0x1b   :  { %p2951_p11 = scmp.ne.s32.totalorder %s3080_s21, %s2950_s14  ;;  %p2956_p13 = scmp.lt.s32.totalorder %s2950_s14, %s2950_s14 }
  0x1d   :  { %p2957_p0 = por %p2956_p13, %p2955_p12 }
  0x1f   :  { %p2958_p1 = pnand %p2957_p0, %p2951_p11 }
  0x21   :  { %2961 = shalt.err (!%p2958_p1)
}
  0x22   :  { %s3038_s1 = smov 384   ;;  %s3039_s15 = smov 24  }
  0x23   :  { %26 = dma.hbm_to_vmem [thread:$0]  %s3508_s0, 3072, %s3080_s21, [#allocation4], %s3038_s1, %s3038_s1, %s3039_s15  }
  0x24   :  { %s3040_s18 = smov [#allocation8]   ;;  %s2962_s23 = scalar_lea.hbm %s3510_s2, 3072 }
  0x25   :  { %s42_s19 = sshll.u32 %s3040_s18, 4  ;;  %p2963_p2 = scmp.ne.s32.totalorder %s3510_s2, %s2962_s23  ;;  %s43_s19 = int_to_ptr.vmem [resolvable:$true] %s42_s19 }
  0x26   :  { %p2966_p3 = scmp.lt.u32.totalorder %s2962_s23, %s3510_s2 }
  0x28   :  { %p2968_p4 = pnand %p2966_p3, %p2963_p2 }
  0x2a   :  { %2971 = shalt.err (!%p2968_p4)
}
  0x2b   :  { %s2972_s28 = scalar_lea.vmem %s43_s19, 3072  ;;  %p2977_p6 = scmp.lt.s32.totalorder %s43_s19, %s43_s19 }
  0x2c   :  { %p2973_p5 = scmp.ne.s32.totalorder %s43_s19, %s2972_s28  ;;  %p2978_p7 = scmp.lt.s32.totalorder %s2972_s28, %s2972_s28 }
  0x2e   :  { %p2979_p8 = por %p2978_p7, %p2977_p6 }
  0x30   :  { %p2980_p9 = pnand %p2979_p8, %p2973_p5 }
  0x32   :  { %2983 = shalt.err (!%p2980_p9)
}
  0x33   :  { %s3041_s0 = smov 192   ;;  %s3042_s21 = smov 12  }
  0x34   :  { %48 = dma.hbm_to_vmem [thread:$0]  %s3510_s2, 3072, %s43_s19, [#allocation7], %s3041_s0, %s3041_s0, %s3042_s21  }
  0x35   :  { %3028 = dma.done.wait [#allocation4], 3072  }
  0x36   :  { %3029 = vsyncadd [#allocation4], 4294964224 }
  0x37   :  { %3030 = dma.done.wait [#allocation7], 3200  }
  0x38   :  { %3031 = vsyncadd [#allocation7], 4294964096  ;;  %v3043_v0 = vmov 0.0   ;;  %v3044_v1 = vmov 0   ;;  %vm3045_vm0 = vmmov 0   ;;  %v3175_v23 = vld [vmem:[#allocation6] sm:$0xff]  ;;  %v106_v36 = vlaneseq }
  0x39   :  { %2552 = vmatprep.subr.bf16.mxu1 %v3043_v0  ;;  %281 = vmatprep.mubr.bf16.mxu0 %v3044_v1  ;;  %v3127_v2 = vld [vmem:[#allocation8 + $0x4] ss:$12 sps:$4 sm:$0xff]   ;;  %v3129_v3 = vld [vmem:[#allocation8] ss:$12 sps:$4 sm:$0xff]   ;;  %v3132_v4 = vld [vmem:[#allocation8 + $0x1c] ss:$12 sps:$4 sm:$0xff]   ;;  %v72_v25 = vpack.c.bf16 %v3175_v23, %v3175_v23 }
  0x3a   :  { %2568 = vmatprep.mubr.msk.bf16.mxu1 %vm3045_vm0, %v3043_v0  ;;  %249 = vmatprep.subr.bf16.mxu0 %v3127_v2  ;;  %v3135_v5 = vld [vmem:[#allocation8 + $0x18] ss:$12 sps:$4 sm:$0xff]   ;;  %v3138_v6 = vld [vmem:[#allocation8 + $0x34] ss:$12 sps:$4 sm:$0xff]   ;;  %v3141_v7 = vld [vmem:[#allocation8 + $0x30] ss:$12 sps:$4 sm:$0xff]  }
  0x3b   :  { %250 = vmatpush1.bf16.msra.mxu0 %v3129_v3  ;;  %v3144_v8 = vld [vmem:[#allocation8 + $0x4c] ss:$12 sps:$4 sm:$0xff]   ;;  %v2747_v9 = vld [vmem:[#allocation8 + $0x8] ss:$12 sps:$4 sm:$0xff]   ;;  %v3150_v11 = vld [vmem:[#allocation8 + $0x64] ss:$12 sps:$4 sm:$0xff]  }
  0x3c   :  { %251 = vmatprep.subr.bf16.mxu0 %v3132_v4  ;;  %v3147_v10 = vld [vmem:[#allocation8 + $0x48] ss:$12 sps:$4 sm:$0xff]   ;;  %2553 = vmatpush3.bf16.msra.mxu1 %v2747_v9  ;;  %v2751_v12 = vld [vmem:[#allocation8 + $0x20] ss:$12 sps:$4 sm:$0xff]   ;;  %v2752_v15 = vld [vmem:[#allocation8 + $0x38] ss:$12 sps:$4 sm:$0xff]  }
  0x3d   :  { %2554 = vmatprep.subr.bf16.mxu1 %v3043_v0  ;;  %v3153_v13 = vld [vmem:[#allocation8 + $0x60] ss:$12 sps:$4 sm:$0xff]   ;;  %v3156_v14 = vld [vmem:[#allocation8 + $0x7c] ss:$12 sps:$4 sm:$0xff]   ;;  %v3160_v16 = vld [vmem:[#allocation8 + $0x78] ss:$12 sps:$4 sm:$0xff]  }
  0x3e   :  { %v3163_v17 = vld [vmem:[#allocation8 + $0x94] ss:$12 sps:$4 sm:$0xff]   ;;  %v2753_v18 = vld [vmem:[#allocation8 + $0x50] ss:$12 sps:$4 sm:$0xff]   ;;  %v3169_v20 = vld [vmem:[#allocation8 + $0xac] ss:$12 sps:$4 sm:$0xff]  }
  0x3f   :  { %252 = vmatpush1.bf16.msra.mxu0 %v3135_v5  ;;  %v3166_v19 = vld [vmem:[#allocation8 + $0x90] ss:$12 sps:$4 sm:$0xff]   ;;  %v2754_v21 = vld [vmem:[#allocation8 + $0x68] ss:$12 sps:$4 sm:$0xff]   ;;  %v2755_v24 = vld [vmem:[#allocation8 + $0x80] ss:$12 sps:$4 sm:$0xff]  }
  0x40   :  { %253 = vmatprep.subr.bf16.mxu0 %v3138_v6  ;;  %2555 = vmatpush3.bf16.msra.mxu1 %v2751_v12  ;;  %v3173_v22 = vld [vmem:[#allocation8 + $0xa8] ss:$12 sps:$4 sm:$0xff]   ;;  %v2756_v26 = vld [vmem:[#allocation8 + $0x98] ss:$12 sps:$4 sm:$0xff]   ;;  %v2757_v27 = vld [vmem:[#allocation8 + $0xb0] ss:$12 sps:$4 sm:$0xff]  }
  0x41   :  { %2556 = vmatprep.subr.bf16.mxu1 %v3043_v0  ;;  %v2758_v28 = vld [vmem:[#allocation8 + $0x8] ss:$12 sps:$4 sm:$0xff]   ;;  %v2759_v29 = vld [vmem:[#allocation8 + $0x20] ss:$12 sps:$4 sm:$0xff]   ;;  %v2760_v30 = vld [vmem:[#allocation8 + $0x38] ss:$12 sps:$4 sm:$0xff]  }
  0x42   :  { %v2761_v31 = vld [vmem:[#allocation8 + $0x50] ss:$12 sps:$4 sm:$0xff]   ;;  %v2762_v32 = vld [vmem:[#allocation8 + $0x68] ss:$12 sps:$4 sm:$0xff]   ;;  %v2763_v33 = vld [vmem:[#allocation8 + $0x80] ss:$12 sps:$4 sm:$0xff]  }
  0x43   :  { %254 = vmatpush1.bf16.msra.mxu0 %v3141_v7  ;;  %v2764_v34 = vld [vmem:[#allocation8 + $0x98] ss:$12 sps:$4 sm:$0xff]   ;;  %v2765_v35 = vld [vmem:[#allocation8 + $0xb0] ss:$12 sps:$4 sm:$0xff]   ;;  %v107_v37 = vshrl.u32 %v106_v36, 7  ;;  %s3047_s8 = smov [#allocation10]  }
  0x44   :  { %255 = vmatprep.subr.bf16.mxu0 %v3144_v8  ;;  %2557 = vmatpush3.bf16.msra.mxu1 %v2752_v15  ;;  %v67_v39 = vld [vmem:[%s3511_s3] sm:$0x7]  ;;  %v70_v50 = vld [vmem:[#allocation3 + $0x8] sm:$0xff]  ;;  %s3046_s3 = smov [#allocation9]   ;;  %s2258_s9 = sshll.u32 %s3047_s8, 4  ;;  %s3477_s9 = int_to_ptr.vmem [resolvable:$true] %s2258_s9 }
  0x45   :  { %2558 = vmatprep.subr.bf16.mxu1 %v3043_v0  ;;  %v108_v38 = vsub.s32 0, %v107_v37  ;;  %v112_v40 = vsub.s32 1, %v107_v37  ;;  %v69_v43 = vld [vmem:[#allocation3] sm:$0xff]  ;;  %v116_v61 = vsub.s32 2, %v107_v37  ;;  %v2771_v36 = vld [vmem:[#allocation8 + $0x80] ss:$12 sps:$4 sm:$0xff]  }
  0x46   :  { %v2772_v37 = vld [vmem:[#allocation8 + $0x98] ss:$12 sps:$4 sm:$0xff]   ;;  %s2245_s7 = sshll.u32 %s3046_s3, 4  ;;  %s2246_s7 = int_to_ptr.vmem [resolvable:$true] %s2245_s7 }
  0x47   :  { %256 = vmatpush1.bf16.msra.mxu0 %v3147_v10  ;;  %v3218_v41 = vrot.slane %v67_v39, %v108_v38  ;;  %v3220_v42 = vrot.slane %v67_v39, %v112_v40  ;;  %v3224_v62 = vrot.slane %v67_v39, %v116_v61  ;;  %v2773_v38 = vld [vmem:[#allocation8 + $0xb0] ss:$12 sps:$4 sm:$0xff]   ;;  %s2984_s10 = scalar_lea.vmem %s2246_s7, 1024  ;;  %p2989_p11 = scmp.lt.s32.totalorder %s2246_s7, %s2246_s7 }
  0x48   :  { %257 = vmatprep.subr.bf16.mxu0 %v3150_v11  ;;  %2559 = vmatpush3.bf16.msra.mxu1 %v2753_v18  ;;  %v71_v18 = vld [vmem:[#allocation3 + $0x10] sm:$0xff]  ;;  %v353_v39 = vld [vmem:[#allocation3 + $0x18] sm:$0xff]  ;;  %p2985_p10 = scmp.ne.s32.totalorder %s2246_s7, %s2984_s10  ;;  %p2990_p12 = scmp.lt.s32.totalorder %s2984_s10, %s2984_s10 }
  0x49   :  { %2560 = vmatprep.subr.bf16.mxu1 %v3043_v0 }
  0x4a   :  { %p2991_p13 = por %p2990_p12, %p2989_p11 }
  0x4b   :  { %258 = vmatpush1.bf16.msra.mxu0 %v3153_v13 }
  0x4c   :  { %259 = vmatprep.subr.bf16.mxu0 %v3156_v14  ;;  %2561 = vmatpush3.bf16.msra.mxu1 %v2754_v21  ;;  %p2992_p0 = pnand %p2991_p13, %p2985_p10 }
  0x4d   :  { %2562 = vmatprep.subr.bf16.mxu1 %v3043_v0 }
  0x4f   :  { %260 = vmatpush1.bf16.msra.mxu0 %v3160_v16 }
  0x50   :  { %261 = vmatprep.subr.bf16.mxu0 %v3163_v17  ;;  %2563 = vmatpush3.bf16.msra.mxu1 %v2755_v24 }
  0x51   :  { %2564 = vmatprep.subr.bf16.mxu1 %v3043_v0 }
  0x53   :  { %262 = vmatpush1.bf16.msra.mxu0 %v3166_v19 }
  0x54   :  { %263 = vmatprep.subr.bf16.mxu0 %v3169_v20  ;;  %2565 = vmatpush3.bf16.msra.mxu1 %v2756_v26 }
  0x55   :  { %2566 = vmatprep.subr.bf16.mxu1 %v3043_v0 }
  0x57   :  { %264 = vmatpush1.bf16.msra.mxu0 %v3173_v22 }
  0x58   :  { %517 = vmatprep.subr.bf16.mxu0 %v3127_v2  ;;  %2567 = vmatpush3.bf16.msra.mxu1 %v2757_v27 }
  0x59   :  { %2572 = vmatprep.subr.bf16.mxu1 %v3043_v0 }
  0x5a   :  { %282 = vmatmul.mubr.bf16.vlgmr.msra.gmra.mrb[0].mxu0 %v72_v25 }
  0x5b   :  { %518 = vmatpush1.bf16.msra.mxu0 %v3129_v3  ;;  %549 = vmatprep.mubr.bf16.mxu0 %v3044_v1 }
  0x5c   :  { %519 = vmatprep.subr.bf16.mxu0 %v3132_v4  ;;  %2569 = vmatmul.mubr.bf16.vlgmr.msra.gmra.mrb[0].mxu1 %v72_v25 }
  0x5d   :  { %2588 = vmatprep.mubr.msk.bf16.mxu1 %vm3045_vm0, %v3043_v0  ;;  %2573 = vmatpush3.bf16.msra.mxu1 %v2758_v28 }
  0x5e   :  { %2574 = vmatprep.subr.bf16.mxu1 %v3043_v0 }
  0x5f   :  { %520 = vmatpush1.bf16.msra.mxu0 %v3135_v5 }
  0x60   :  { %521 = vmatprep.subr.bf16.mxu0 %v3138_v6 }
  0x61   :  { %2575 = vmatpush3.bf16.msra.mxu1 %v2759_v29 }
  0x62   :  { %2576 = vmatprep.subr.bf16.mxu1 %v3043_v0 }
  0x63   :  { %522 = vmatpush1.bf16.msra.mxu0 %v3141_v7 }
  0x64   :  { %523 = vmatprep.subr.bf16.mxu0 %v3144_v8 }
  0x65   :  { %2577 = vmatpush3.bf16.msra.mxu1 %v2760_v30 }
  0x66   :  { %2578 = vmatprep.subr.bf16.mxu1 %v3043_v0 }
  0x67   :  { %524 = vmatpush1.bf16.msra.mxu0 %v3147_v10 }
  0x68   :  { %525 = vmatprep.subr.bf16.mxu0 %v3150_v11 }
  0x69   :  { %2579 = vmatpush3.bf16.msra.mxu1 %v2761_v31 }
  0x6a   :  { %2580 = vmatprep.subr.bf16.mxu1 %v3043_v0 }
  0x6b   :  { %526 = vmatpush1.bf16.msra.mxu0 %v3153_v13 }
  0x6c   :  { %527 = vmatprep.subr.bf16.mxu0 %v3156_v14 }
  0x6d   :  { %2581 = vmatpush3.bf16.msra.mxu1 %v2762_v32  ;;  %v2767_v32 = vld [vmem:[#allocation8 + $0x20] ss:$12 sps:$4 sm:$0xff]  }
  0x6e   :  { %2582 = vmatprep.subr.bf16.mxu1 %v3043_v0 }
  0x6f   :  { %528 = vmatpush1.bf16.msra.mxu0 %v3160_v16 }
  0x70   :  { %529 = vmatprep.subr.bf16.mxu0 %v3163_v17 }
  0x71   :  { %2583 = vmatpush3.bf16.msra.mxu1 %v2763_v33  ;;  %v2768_v33 = vld [vmem:[#allocation8 + $0x38] ss:$12 sps:$4 sm:$0xff]  }
  0x72   :  { %2584 = vmatprep.subr.bf16.mxu1 %v3043_v0 }
  0x73   :  { %530 = vmatpush1.bf16.msra.mxu0 %v3166_v19 }
  0x74   :  { %531 = vmatprep.subr.bf16.mxu0 %v3169_v20 }
  0x75   :  { %2585 = vmatpush3.bf16.msra.mxu1 %v2764_v34  ;;  %v2769_v34 = vld [vmem:[#allocation8 + $0x50] ss:$12 sps:$4 sm:$0xff]  }
  0x76   :  { %2586 = vmatprep.subr.bf16.mxu1 %v3043_v0 }
  0x77   :  { %532 = vmatpush1.bf16.msra.mxu0 %v3173_v22 }
  0x78   :  { %786 = vmatprep.subr.bf16.mxu0 %v3127_v2 }
  0x79   :  { %2587 = vmatpush3.bf16.msra.mxu1 %v2765_v35  ;;  %v2770_v35 = vld [vmem:[#allocation8 + $0x68] ss:$12 sps:$4 sm:$0xff]  }
  0x7a   :  { %2592 = vmatprep.subr.bf16.mxu1 %v3043_v0 }
 0x12d   :  { %v283_v44 = vpop.f32.mrb[0].mxu0 }
 0x12e   :  { %v284_v45 = vadd.f32 %v283_v44, %v3218_v41  ;;  %v285_v46 = vpop.f32.mrb[1].mxu0 }
 0x12f   :  { %v286_v47 = vadd.f32 %v285_v46, %v3220_v42  ;;  %v287_v48 = vpop.f32.mrb[2].mxu0  ;;  %v324_v54 = vpop.f32.mrb[0].mxu1 }
 0x130   :  { %v330_v49 = vadd.f32 %v284_v45, %v69_v43  ;;  %v288_v51 = vpop.f32.mrb[3].mxu0  ;;  %v2570_v56 = vpop.f32.mrb[1].mxu1  ;;  %v325_v12 = vadd.f32 %v324_v54, %v3224_v62 }
 0x131   :  { %v337_v53 = vadd.f32 %v286_v47, %v70_v50  ;;  %v327_v57 = vpop.f32.mrb[2].mxu1  ;;  %v354_v51 = vld [vmem:[#allocation3 + $0x20] sm:$0xff] }
 0x132   :  { %v2296_v52 = vmul.f32 -1.442695, %v330_v49  ;;  %v2571_v58 = vpop.f32.mrb[3].mxu1 }
 0x133   :  { %v2297_v55 = vmul.f32 -1.442695, %v337_v53 }
 0x134   :  { %2838 = vpow2.f32 %v2296_v52 }
 0x135   :  { %2840 = vpow2.f32 %v2297_v55 }
 0x13e   :  { %v2839_v59 = vpop.eup %2838 }
 0x13f   :  { %v334_v60 = vadd.f32 1.0, %v2839_v59  ;;  %v2841_v63 = vpop.eup %2840 }
 0x140   :  { %v341_v9 = vadd.f32 1.0, %v2841_v63 }
 0x141   :  { %2842 = vrcp.f32 %v334_v60 }
 0x142   :  { %2844 = vrcp.f32 %v341_v9  ;;  %v355_v9 = vld [vmem:[#allocation3 + $0x28] sm:$0xff] }
 0x14b   :  { %v2843_v15 = vpop.eup %2842 }
 0x14c   :  { %v344_v21 = vmul.f32 %v2843_v15, %v325_v12  ;;  %v2845_v25 = vpop.eup %2844 }
 0x14d   :  { %v347_v26 = vsub.f32 1.0, %v2845_v25  ;;  %v349_v29 = vmul.f32 %v2845_v25, %v3175_v23  ;;  %v2766_v23 = vld [vmem:[#allocation8 + $0x8] ss:$12 sps:$4 sm:$0xff]  }
 0x14e   :  { %v345_v24 = vadd.f32 %v344_v21, %v71_v18 }
 0x150   :  { %2846 = vtanh.f32 %v345_v24 }
 0x15a   :  { %v2847_v27 = vpop.eup %2846 }
 0x15b   :  { %v348_v28 = vmul.f32 %v2847_v27, %v347_v26 }
 0x15d   :  { %v3228_v30 = vadd.f32 %v349_v29, %v348_v28 }
 0x15f   :  { %351 = vst [vmem:[#allocation9] sm:$0xff] %v3228_v30  ;;  %v356_v31 = vpack.c.bf16 %v3228_v30, %v3228_v30 }
 0x161   :  { %550 = vmatmul.mubr.bf16.vlgmr.msra.gmra.mrb[4].mxu0 %v356_v31  ;;  %2589 = vmatmul.mubr.bf16.vlgmr.msra.gmra.mrb[4].mxu1 %v356_v31 }
 0x162   :  { %787 = vmatpush1.bf16.msra.mxu0 %v3129_v3  ;;  %818 = vmatprep.mubr.bf16.mxu0 %v3044_v1 }
 0x163   :  { %788 = vmatprep.subr.bf16.mxu0 %v3132_v4  ;;  %2608 = vmatprep.mubr.msk.bf16.mxu1 %vm3045_vm0, %v3043_v0 }
 0x164   :  { %2593 = vmatpush3.bf16.msra.mxu1 %v2766_v23  ;;  %v623_v23 = vld [vmem:[#allocation3 + $0x38] sm:$0xff] }
 0x165   :  { %2594 = vmatprep.subr.bf16.mxu1 %v3043_v0 }
 0x166   :  { %789 = vmatpush1.bf16.msra.mxu0 %v3135_v5 }
 0x167   :  { %790 = vmatprep.subr.bf16.mxu0 %v3138_v6 }
 0x168   :  { %2595 = vmatpush3.bf16.msra.mxu1 %v2767_v32 }
 0x169   :  { %2596 = vmatprep.subr.bf16.mxu1 %v3043_v0 }
 0x16a   :  { %791 = vmatpush1.bf16.msra.mxu0 %v3141_v7 }
 0x16b   :  { %792 = vmatprep.subr.bf16.mxu0 %v3144_v8 }
 0x16c   :  { %2597 = vmatpush3.bf16.msra.mxu1 %v2768_v33 }
 0x16d   :  { %2598 = vmatprep.subr.bf16.mxu1 %v3043_v0 }
 0x16e   :  { %793 = vmatpush1.bf16.msra.mxu0 %v3147_v10 }
 0x16f   :  { %794 = vmatprep.subr.bf16.mxu0 %v3150_v11 }
 0x170   :  { %2599 = vmatpush3.bf16.msra.mxu1 %v2769_v34 }
 0x171   :  { %2600 = vmatprep.subr.bf16.mxu1 %v3043_v0 }
 0x172   :  { %795 = vmatpush1.bf16.msra.mxu0 %v3153_v13 }
 0x173   :  { %796 = vmatprep.subr.bf16.mxu0 %v3156_v14 }
 0x174   :  { %2601 = vmatpush3.bf16.msra.mxu1 %v2770_v35 }
 0x175   :  { %2602 = vmatprep.subr.bf16.mxu1 %v3043_v0 }
 0x176   :  { %797 = vmatpush1.bf16.msra.mxu0 %v3160_v16 }
 0x177   :  { %798 = vmatprep.subr.bf16.mxu0 %v3163_v17 }
 0x178   :  { %2603 = vmatpush3.bf16.msra.mxu1 %v2771_v36 }
 0x179   :  { %2604 = vmatprep.subr.bf16.mxu1 %v3043_v0 }
 0x17a   :  { %799 = vmatpush1.bf16.msra.mxu0 %v3166_v19 }
 0x17b   :  { %800 = vmatprep.subr.bf16.mxu0 %v3169_v20 }
 0x17c   :  { %2605 = vmatpush3.bf16.msra.mxu1 %v2772_v37 }
 0x17d   :  { %2606 = vmatprep.subr.bf16.mxu1 %v3043_v0 }
 0x17e   :  { %801 = vmatpush1.bf16.msra.mxu0 %v3173_v22 }
 0x17f   :  { %1055 = vmatprep.subr.bf16.mxu0 %v3127_v2 }
 0x180   :  { %2607 = vmatpush3.bf16.msra.mxu1 %v2773_v38 }
 0x181   :  { %2612 = vmatprep.subr.bf16.mxu1 %v3043_v0 }
 0x234   :  { %v551_v40 = vpop.f32.mrb[4].mxu0  ;;  %v592_v43 = vpop.f32.mrb[4].mxu1 }
 0x235   :  { %v552_v44 = vadd.f32 %v551_v40, %v3218_v41  ;;  %v553_v45 = vpop.f32.mrb[5].mxu0  ;;  %v2590_v46 = vpop.f32.mrb[5].mxu1  ;;  %v593_v61 = vadd.f32 %v592_v43, %v3224_v62 }
 0x236   :  { %v554_v47 = vadd.f32 %v553_v45, %v3220_v42  ;;  %v555_v48 = vpop.f32.mrb[6].mxu0  ;;  %v595_v49 = vpop.f32.mrb[6].mxu1  ;;  %v624_v45 = vld [vmem:[#allocation3 + $0x40] sm:$0xff] }
 0x237   :  { %v598_v50 = vadd.f32 %v552_v44, %v353_v39  ;;  %v556_v52 = vpop.f32.mrb[7].mxu0  ;;  %v2591_v53 = vpop.f32.mrb[7].mxu1 }
 0x238   :  { %v605_v55 = vadd.f32 %v554_v47, %v354_v51 }
 0x239   :  { %v2322_v54 = vmul.f32 -1.442695, %v598_v50 }
 0x23a   :  { %v2323_v56 = vmul.f32 -1.442695, %v605_v55  ;;  %v2782_v55 = vld [vmem:[#allocation8 + $0x8] ss:$12 sps:$4 sm:$0xff]  }
 0x23b   :  { %2848 = vpow2.f32 %v2322_v54 }
 0x23c   :  { %2850 = vpow2.f32 %v2323_v56  ;;  %v3309_v56 = vld [vmem:[#allocation8 + $0x1c] ss:$12 sps:$4 sm:$0xff]  }
 0x245   :  { %v2849_v57 = vpop.eup %2848 }
 0x246   :  { %v602_v58 = vadd.f32 1.0, %v2849_v57  ;;  %v2851_v59 = vpop.eup %2850  ;;  %v3312_v57 = vld [vmem:[#allocation8 + $0x18] ss:$12 sps:$4 sm:$0xff]  }
 0x247   :  { %v609_v60 = vadd.f32 1.0, %v2851_v59  ;;  %v3319_v59 = vld [vmem:[#allocation8 + $0x30] ss:$12 sps:$4 sm:$0xff]  }
 0x248   :  { %2852 = vrcp.f32 %v602_v58  ;;  %v2786_v58 = vld [vmem:[#allocation8 + $0x20] ss:$12 sps:$4 sm:$0xff]  }
 0x249   :  { %2854 = vrcp.f32 %v609_v60  ;;  %v2790_v60 = vld [vmem:[#allocation8 + $0x38] ss:$12 sps:$4 sm:$0xff]  }
 0x252   :  { %v2853_v63 = vpop.eup %2852 }
 0x253   :  { %v612_v12 = vmul.f32 %v2853_v63, %v593_v61  ;;  %v2855_v18 = vpop.eup %2854  ;;  %v3323_v61 = vld [vmem:[#allocation8 + $0x4c] ss:$12 sps:$4 sm:$0xff]   ;;  %v3326_v63 = vld [vmem:[#allocation8 + $0x48] ss:$12 sps:$4 sm:$0xff]  }
 0x254   :  { %v615_v21 = vsub.f32 1.0, %v2855_v18  ;;  %v617_v26 = vmul.f32 %v2855_v18, %v3228_v30  ;;  %v2798_v18 = vld [vmem:[#allocation8 + $0x68] ss:$12 sps:$4 sm:$0xff]  }
 0x255   :  { %v613_v15 = vadd.f32 %v612_v12, %v355_v9  ;;  %v2794_v9 = vld [vmem:[#allocation8 + $0x50] ss:$12 sps:$4 sm:$0xff]  }
 0x256   :  { %v3330_v12 = vld [vmem:[#allocation8 + $0x64] ss:$12 sps:$4 sm:$0xff]  }
 0x257   :  { %2856 = vtanh.f32 %v613_v15  ;;  %v3333_v15 = vld [vmem:[#allocation8 + $0x60] ss:$12 sps:$4 sm:$0xff]  }
 0x261   :  { %v2857_v24 = vpop.eup %2856 }
 0x262   :  { %v616_v25 = vmul.f32 %v2857_v24, %v615_v21  ;;  %v3336_v21 = vld [vmem:[#allocation8 + $0x7c] ss:$12 sps:$4 sm:$0xff]   ;;  %v3339_v24 = vld [vmem:[#allocation8 + $0x78] ss:$12 sps:$4 sm:$0xff]  }
 0x264   :  { %v3264_v27 = vadd.f32 %v617_v26, %v616_v25  ;;  %v2802_v25 = vld [vmem:[#allocation8 + $0x80] ss:$12 sps:$4 sm:$0xff]  }
 0x265   :  { %v3343_v26 = vld [vmem:[#allocation8 + $0x94] ss:$12 sps:$4 sm:$0xff]  }
 0x266   :  { %620 = vst [vmem:[#allocation9 + $0x8] sm:$0xff] %v3264_v27  ;;  %v625_v28 = vpack.c.bf16 %v3264_v27, %v3264_v27 }
 0x268   :  { %819 = vmatmul.mubr.bf16.vlgmr.msra.gmra.mrb[8].mxu0 %v625_v28  ;;  %2609 = vmatmul.mubr.bf16.vlgmr.msra.gmra.mrb[8].mxu1 %v625_v28  ;;  %v2806_v28 = vld [vmem:[#allocation8 + $0x98] ss:$12 sps:$4 sm:$0xff]  }
 0x269   :  { %1056 = vmatpush1.bf16.msra.mxu0 %v3129_v3  ;;  %1087 = vmatprep.mubr.bf16.mxu0 %v3044_v1 }
 0x26a   :  { %1057 = vmatprep.subr.bf16.mxu0 %v3132_v4  ;;  %2628 = vmatprep.mubr.msk.bf16.mxu1 %vm3045_vm0, %v3043_v0  ;;  %v2774_v4 = vld [vmem:[#allocation8 + $0x8] ss:$12 sps:$4 sm:$0xff]  }
 0x26b   :  { %2613 = vmatpush3.bf16.msra.mxu1 %v2774_v4  ;;  %v3350_v4 = vld [vmem:[#allocation8 + $0xac] ss:$12 sps:$4 sm:$0xff]  }
 0x26c   :  { %2614 = vmatprep.subr.bf16.mxu1 %v3043_v0 }
 0x26d   :  { %1058 = vmatpush1.bf16.msra.mxu0 %v3135_v5  ;;  %v2775_v5 = vld [vmem:[#allocation8 + $0x20] ss:$12 sps:$4 sm:$0xff]  }
 0x26e   :  { %1059 = vmatprep.subr.bf16.mxu0 %v3138_v6  ;;  %v2776_v6 = vld [vmem:[#allocation8 + $0x38] ss:$12 sps:$4 sm:$0xff]  }
 0x26f   :  { %2615 = vmatpush3.bf16.msra.mxu1 %v2775_v5  ;;  %v3353_v5 = vld [vmem:[#allocation8 + $0xa8] ss:$12 sps:$4 sm:$0xff]  }
 0x270   :  { %2616 = vmatprep.subr.bf16.mxu1 %v3043_v0 }
 0x271   :  { %1060 = vmatpush1.bf16.msra.mxu0 %v3141_v7  ;;  %v2777_v7 = vld [vmem:[#allocation8 + $0x50] ss:$12 sps:$4 sm:$0xff]  }
 0x272   :  { %1061 = vmatprep.subr.bf16.mxu0 %v3144_v8  ;;  %v2778_v8 = vld [vmem:[#allocation8 + $0x68] ss:$12 sps:$4 sm:$0xff]  }
 0x273   :  { %2617 = vmatpush3.bf16.msra.mxu1 %v2776_v6  ;;  %v2810_v6 = vld [vmem:[#allocation8 + $0xb0] ss:$12 sps:$4 sm:$0xff]  }
 0x274   :  { %2618 = vmatprep.subr.bf16.mxu1 %v3043_v0 }
 0x275   :  { %1062 = vmatpush1.bf16.msra.mxu0 %v3147_v10  ;;  %v2779_v10 = vld [vmem:[#allocation8 + $0x80] ss:$12 sps:$4 sm:$0xff]  }
 0x276   :  { %1063 = vmatprep.subr.bf16.mxu0 %v3150_v11  ;;  %v2781_v11 = vld [vmem:[#allocation8 + $0xb0] ss:$12 sps:$4 sm:$0xff]  }
 0x277   :  { %2619 = vmatpush3.bf16.msra.mxu1 %v2777_v7  ;;  %v891_v7 = vld [vmem:[#allocation3 + $0x48] sm:$0xff] }
 0x278   :  { %2620 = vmatprep.subr.bf16.mxu1 %v3043_v0 }
 0x279   :  { %1064 = vmatpush1.bf16.msra.mxu0 %v3153_v13  ;;  %v622_v13 = vld [vmem:[#allocation3 + $0x30] sm:$0xff] }
 0x27a   :  { %1065 = vmatprep.subr.bf16.mxu0 %v3156_v14 }
 0x27b   :  { %2621 = vmatpush3.bf16.msra.mxu1 %v2778_v8 }
 0x27c   :  { %2622 = vmatprep.subr.bf16.mxu1 %v3043_v0 }
 0x27d   :  { %1066 = vmatpush1.bf16.msra.mxu0 %v3160_v16 }
 0x27e   :  { %1067 = vmatprep.subr.bf16.mxu0 %v3163_v17 }
 0x27f   :  { %2623 = vmatpush3.bf16.msra.mxu1 %v2779_v10 }
 0x280   :  { %2624 = vmatprep.subr.bf16.mxu1 %v3043_v0 }
 0x281   :  { %1068 = vmatpush1.bf16.msra.mxu0 %v3166_v19 }
 0x282   :  { %1069 = vmatprep.subr.bf16.mxu0 %v3169_v20 }
 0x285   :  { %1070 = vmatpush1.bf16.msra.mxu0 %v3173_v22 }
 0x286   :  { %1324 = vmatprep.subr.bf16.mxu0 %v3127_v2  ;;  %v2780_v2 = vld [vmem:[#allocation8 + $0x98] ss:$12 sps:$4 sm:$0xff]  }
 0x287   :  { %2625 = vmatpush3.bf16.msra.mxu1 %v2780_v2 }
 0x288   :  { %2626 = vmatprep.subr.bf16.mxu1 %v3043_v0 }
 0x28b   :  { %2627 = vmatpush3.bf16.msra.mxu1 %v2781_v11 }
 0x28c   :  { %2632 = vmatprep.subr.bf16.mxu1 %v3043_v0 }
 0x33b   :  { %v820_v14 = vpop.f32.mrb[8].mxu0  ;;  %v861_v16 = vpop.f32.mrb[8].mxu1 }
 0x33c   :  { %v821_v17 = vadd.f32 %v820_v14, %v3218_v41  ;;  %v822_v19 = vpop.f32.mrb[9].mxu0  ;;  %v2610_v20 = vpop.f32.mrb[9].mxu1  ;;  %v862_v43 = vadd.f32 %v861_v16, %v3224_v62 }
 0x33d   :  { %v823_v22 = vadd.f32 %v822_v19, %v3220_v42  ;;  %v824_v29 = vpop.f32.mrb[10].mxu0  ;;  %v864_v30 = vpop.f32.mrb[10].mxu1  ;;  %v892_v20 = vld [vmem:[#allocation3 + $0x50] sm:$0xff] }
 0x33e   :  { %v867_v31 = vadd.f32 %v821_v17, %v622_v13  ;;  %v825_v32 = vpop.f32.mrb[11].mxu0  ;;  %v2611_v33 = vpop.f32.mrb[11].mxu1 }
 0x33f   :  { %v874_v35 = vadd.f32 %v823_v22, %v623_v23 }
 0x340   :  { %v2348_v34 = vmul.f32 -1.442695, %v867_v31 }
 0x341   :  { %v2349_v36 = vmul.f32 -1.442695, %v874_v35 }
 0x342   :  { %2858 = vpow2.f32 %v2348_v34 }
 0x343   :  { %2860 = vpow2.f32 %v2349_v36 }
 0x34c   :  { %v2859_v37 = vpop.eup %2858 }
 0x34d   :  { %v871_v38 = vadd.f32 1.0, %v2859_v37  ;;  %v2861_v39 = vpop.eup %2860 }
 0x34e   :  { %v878_v40 = vadd.f32 1.0, %v2861_v39 }
 0x34f   :  { %2862 = vrcp.f32 %v871_v38  ;;  %v893_v38 = vld [vmem:[#allocation3 + $0x58] sm:$0xff] }
 0x350   :  { %2864 = vrcp.f32 %v878_v40 }
 0x359   :  { %v2863_v44 = vpop.eup %2862 }
 0x35a   :  { %v881_v46 = vmul.f32 %v2863_v44, %v862_v43  ;;  %v2865_v48 = vpop.eup %2864 }
 0x35b   :  { %v884_v49 = vsub.f32 1.0, %v2865_v48  ;;  %v886_v52 = vmul.f32 %v2865_v48, %v3264_v27  ;;  %v3346_v27 = vld [vmem:[#allocation8 + $0x90] ss:$12 sps:$4 sm:$0xff]  }
 0x35c   :  { %v882_v47 = vadd.f32 %v881_v46, %v624_v45 }
 0x35e   :  { %2866 = vtanh.f32 %v882_v47 }
 0x368   :  { %v2867_v50 = vpop.eup %2866 }
 0x369   :  { %v885_v51 = vmul.f32 %v2867_v50, %v884_v49  ;;  %v3371_v50 = vld [vmem:[#allocation8 + $0x4] ss:$12 sps:$4 sm:$0xff]  }
 0x36b   :  { %v3300_v53 = vadd.f32 %v886_v52, %v885_v51  ;;  %v3373_v51 = vld [vmem:[#allocation8] ss:$12 sps:$4 sm:$0xff]   ;;  %v2814_v52 = vld [vmem:[#allocation8 + $0x8] ss:$12 sps:$4 sm:$0xff]  }
 0x36d   :  { %889 = vst [vmem:[#allocation9 + $0x10] sm:$0xff] %v3300_v53  ;;  %v894_v54 = vpack.c.bf16 %v3300_v53, %v3300_v53 }
 0x36f   :  { %1088 = vmatmul.mubr.bf16.vlgmr.msra.gmra.mrb[12].mxu0 %v894_v54  ;;  %2629 = vmatmul.mubr.bf16.vlgmr.msra.gmra.mrb[12].mxu1 %v894_v54  ;;  %v2816_v54 = vld [vmem:[#allocation8 + $0x38] ss:$12 sps:$4 sm:$0xff]  }
 0x370   :  { %1325 = vmatpush1.bf16.msra.mxu0 %v3129_v3  ;;  %1356 = vmatprep.mubr.bf16.mxu0 %v3044_v1  ;;  %v3316_v3 = vld [vmem:[#allocation8 + $0x34] ss:$12 sps:$4 sm:$0xff]  }
 0x371   :  { %2648 = vmatprep.mubr.msk.bf16.mxu1 %vm3045_vm0, %v3043_v0  ;;  %2633 = vmatpush3.bf16.msra.mxu1 %v2782_v55  ;;  %v2817_v55 = vld [vmem:[#allocation8 + $0x50] ss:$12 sps:$4 sm:$0xff]  }
 0x372   :  { %2634 = vmatprep.subr.bf16.mxu1 %v3043_v0  ;;  %1326 = vmatprep.subr.bf16.mxu0 %v3309_v56 }
 0x374   :  { %1327 = vmatpush1.bf16.msra.mxu0 %v3312_v57 }
 0x375   :  { %2635 = vmatpush3.bf16.msra.mxu1 %v2786_v58  ;;  %1328 = vmatprep.subr.bf16.mxu0 %v3316_v3  ;;  %v2818_v58 = vld [vmem:[#allocation8 + $0x68] ss:$12 sps:$4 sm:$0xff]  }
 0x376   :  { %2636 = vmatprep.subr.bf16.mxu1 %v3043_v0 }
 0x378   :  { %1329 = vmatpush1.bf16.msra.mxu0 %v3319_v59 }
 0x379   :  { %2637 = vmatpush3.bf16.msra.mxu1 %v2790_v60  ;;  %1330 = vmatprep.subr.bf16.mxu0 %v3323_v61  ;;  %v2819_v60 = vld [vmem:[#allocation8 + $0x80] ss:$12 sps:$4 sm:$0xff]  }
 0x37a   :  { %2638 = vmatprep.subr.bf16.mxu1 %v3043_v0 }
 0x37c   :  { %1331 = vmatpush1.bf16.msra.mxu0 %v3326_v63 }
 0x37d   :  { %2639 = vmatpush3.bf16.msra.mxu1 %v2794_v9  ;;  %1332 = vmatprep.subr.bf16.mxu0 %v3330_v12  ;;  %v2820_v9 = vld [vmem:[#allocation8 + $0x98] ss:$12 sps:$4 sm:$0xff]  }
 0x37e   :  { %2640 = vmatprep.subr.bf16.mxu1 %v3043_v0 }
 0x380   :  { %1333 = vmatpush1.bf16.msra.mxu0 %v3333_v15 }
 0x381   :  { %2641 = vmatpush3.bf16.msra.mxu1 %v2798_v18  ;;  %1334 = vmatprep.subr.bf16.mxu0 %v3336_v21  ;;  %v2821_v18 = vld [vmem:[#allocation8 + $0xb0] ss:$12 sps:$4 sm:$0xff]  }
 0x382   :  { %2642 = vmatprep.subr.bf16.mxu1 %v3043_v0 }
 0x384   :  { %1335 = vmatpush1.bf16.msra.mxu0 %v3339_v24 }
 0x385   :  { %2643 = vmatpush3.bf16.msra.mxu1 %v2802_v25  ;;  %1336 = vmatprep.subr.bf16.mxu0 %v3343_v26  ;;  %v1160_v25 = vld [vmem:[#allocation3 + $0x60] sm:$0xff] }
 0x386   :  { %2644 = vmatprep.subr.bf16.mxu1 %v3043_v0 }
 0x388   :  { %1337 = vmatpush1.bf16.msra.mxu0 %v3346_v27 }
 0x389   :  { %2645 = vmatpush3.bf16.msra.mxu1 %v2806_v28  ;;  %1338 = vmatprep.subr.bf16.mxu0 %v3350_v4 }
 0x38a   :  { %2646 = vmatprep.subr.bf16.mxu1 %v3043_v0 }
 0x38c   :  { %1339 = vmatpush1.bf16.msra.mxu0 %v3353_v5 }
 0x38d   :  { %2647 = vmatpush3.bf16.msra.mxu1 %v2810_v6  ;;  %1593 = vmatprep.subr.bf16.mxu0 %v3371_v50 }
 0x38e   :  { %2652 = vmatprep.subr.bf16.mxu1 %v3043_v0 }
 0x442   :  { %v1089_v8 = vpop.f32.mrb[12].mxu0  ;;  %v1130_v10 = vpop.f32.mrb[12].mxu1 }
 0x443   :  { %v1090_v2 = vadd.f32 %v1089_v8, %v3218_v41  ;;  %v1091_v11 = vpop.f32.mrb[13].mxu0  ;;  %v2630_v13 = vpop.f32.mrb[13].mxu1  ;;  %v1131_v36 = vadd.f32 %v1130_v10, %v3224_v62 }
 0x444   :  { %v1092_v14 = vadd.f32 %v1091_v11, %v3220_v42  ;;  %v1093_v16 = vpop.f32.mrb[14].mxu0  ;;  %v1133_v17 = vpop.f32.mrb[14].mxu1 }
 0x445   :  { %v1136_v19 = vadd.f32 %v1090_v2, %v891_v7  ;;  %v1094_v22 = vpop.f32.mrb[15].mxu0  ;;  %v2631_v29 = vpop.f32.mrb[15].mxu1  ;;  %v1161_v16 = vld [vmem:[#allocation3 + $0x68] sm:$0xff] }
 0x446   :  { %v1143_v31 = vadd.f32 %v1092_v14, %v892_v20 }
 0x447   :  { %v2374_v30 = vmul.f32 -1.442695, %v1136_v19 }
 0x448   :  { %v2375_v23 = vmul.f32 -1.442695, %v1143_v31 }
 0x449   :  { %2868 = vpow2.f32 %v2374_v30 }
 0x44a   :  { %2870 = vpow2.f32 %v2375_v23 }
 0x453   :  { %v2869_v32 = vpop.eup %2868 }
 0x454   :  { %v1140_v33 = vadd.f32 1.0, %v2869_v32  ;;  %v2871_v34 = vpop.eup %2870 }
 0x455   :  { %v1147_v35 = vadd.f32 1.0, %v2871_v34 }
 0x456   :  { %2872 = vrcp.f32 %v1140_v33 }
 0x457   :  { %2874 = vrcp.f32 %v1147_v35  ;;  %v1162_v35 = vld [vmem:[#allocation3 + $0x70] sm:$0xff] }
 0x460   :  { %v2873_v37 = vpop.eup %2872 }
 0x461   :  { %v1150_v39 = vmul.f32 %v2873_v37, %v1131_v36  ;;  %v2875_v43 = vpop.eup %2874 }
 0x462   :  { %v1153_v44 = vsub.f32 1.0, %v2875_v43  ;;  %v1155_v47 = vmul.f32 %v2875_v43, %v3300_v53  ;;  %v2815_v53 = vld [vmem:[#allocation8 + $0x20] ss:$12 sps:$4 sm:$0xff]  }
 0x463   :  { %v1151_v40 = vadd.f32 %v1150_v39, %v893_v38 }
 0x465   :  { %2876 = vtanh.f32 %v1151_v40 }
 0x46f   :  { %v2877_v45 = vpop.eup %2876 }
 0x470   :  { %v1154_v46 = vmul.f32 %v2877_v45, %v1153_v44 }
 0x472   :  { %v3363_v48 = vadd.f32 %v1155_v47, %v1154_v46  ;;  %v2822_v47 = vld [vmem:[#allocation8 + $0x8] ss:$12 sps:$4 sm:$0xff]  }
 0x474   :  { %1158 = vst [vmem:[#allocation9 + $0x18] sm:$0xff] %v3363_v48  ;;  %v1163_v49 = vpack.c.bf16 %v3363_v48, %v3363_v48 }
 0x476   :  { %1357 = vmatmul.mubr.bf16.vlgmr.msra.gmra.mrb[16].mxu0 %v1163_v49  ;;  %2649 = vmatmul.mubr.bf16.vlgmr.msra.gmra.mrb[16].mxu1 %v1163_v49  ;;  %v2824_v49 = vld [vmem:[#allocation8 + $0x38] ss:$12 sps:$4 sm:$0xff]  }
 0x477   :  { %1625 = vmatprep.mubr.bf16.mxu0 %v3044_v1  ;;  %2668 = vmatprep.mubr.msk.bf16.mxu1 %vm3045_vm0, %v3043_v0 }
 0x478   :  { %1594 = vmatpush1.bf16.msra.mxu0 %v3373_v51  ;;  %2653 = vmatpush3.bf16.msra.mxu1 %v2814_v52  ;;  %v2825_v52 = vld [vmem:[#allocation8 + $0x50] ss:$12 sps:$4 sm:$0xff]  }
 0x479   :  { %1595 = vmatprep.subr.bf16.mxu0 %v3309_v56  ;;  %2654 = vmatprep.subr.bf16.mxu1 %v3043_v0 }
 0x47c   :  { %1596 = vmatpush1.bf16.msra.mxu0 %v3312_v57  ;;  %2655 = vmatpush3.bf16.msra.mxu1 %v2815_v53  ;;  %v2826_v53 = vld [vmem:[#allocation8 + $0x68] ss:$12 sps:$4 sm:$0xff]  }
 0x47d   :  { %1597 = vmatprep.subr.bf16.mxu0 %v3316_v3  ;;  %2656 = vmatprep.subr.bf16.mxu1 %v3043_v0 }
 0x480   :  { %1598 = vmatpush1.bf16.msra.mxu0 %v3319_v59  ;;  %2657 = vmatpush3.bf16.msra.mxu1 %v2816_v54  ;;  %v2827_v54 = vld [vmem:[#allocation8 + $0x80] ss:$12 sps:$4 sm:$0xff]  }
 0x481   :  { %1599 = vmatprep.subr.bf16.mxu0 %v3323_v61  ;;  %2658 = vmatprep.subr.bf16.mxu1 %v3043_v0 }
 0x484   :  { %1600 = vmatpush1.bf16.msra.mxu0 %v3326_v63  ;;  %2659 = vmatpush3.bf16.msra.mxu1 %v2817_v55  ;;  %v2829_v55 = vld [vmem:[#allocation8 + $0xb0] ss:$12 sps:$4 sm:$0xff]  }
 0x485   :  { %1601 = vmatprep.subr.bf16.mxu0 %v3330_v12  ;;  %2660 = vmatprep.subr.bf16.mxu1 %v3043_v0 }
 0x488   :  { %1602 = vmatpush1.bf16.msra.mxu0 %v3333_v15  ;;  %2661 = vmatpush3.bf16.msra.mxu1 %v2818_v58  ;;  %v1429_v58 = vld [vmem:[#allocation3 + $0x78] sm:$0xff] }
 0x489   :  { %1603 = vmatprep.subr.bf16.mxu0 %v3336_v21  ;;  %2662 = vmatprep.subr.bf16.mxu1 %v3043_v0 }
 0x48c   :  { %1604 = vmatpush1.bf16.msra.mxu0 %v3339_v24  ;;  %2663 = vmatpush3.bf16.msra.mxu1 %v2819_v60 }
 0x48d   :  { %1605 = vmatprep.subr.bf16.mxu0 %v3343_v26  ;;  %2664 = vmatprep.subr.bf16.mxu1 %v3043_v0 }
 0x490   :  { %1606 = vmatpush1.bf16.msra.mxu0 %v3346_v27  ;;  %2665 = vmatpush3.bf16.msra.mxu1 %v2820_v9 }
 0x491   :  { %1607 = vmatprep.subr.bf16.mxu0 %v3350_v4  ;;  %2666 = vmatprep.subr.bf16.mxu1 %v3043_v0 }
 0x494   :  { %1608 = vmatpush1.bf16.msra.mxu0 %v3353_v5  ;;  %2667 = vmatpush3.bf16.msra.mxu1 %v2821_v18 }
 0x495   :  { %1862 = vmatprep.subr.bf16.mxu0 %v3371_v50  ;;  %2672 = vmatprep.subr.bf16.mxu1 %v3043_v0 }
 0x549   :  { %v1358_v28 = vpop.f32.mrb[16].mxu0  ;;  %v1399_v6 = vpop.f32.mrb[16].mxu1 }
 0x54a   :  { %v1359_v7 = vadd.f32 %v1358_v28, %v3218_v41  ;;  %v1360_v8 = vpop.f32.mrb[17].mxu0  ;;  %v2650_v10 = vpop.f32.mrb[17].mxu1  ;;  %v1400_v33 = vadd.f32 %v1399_v6, %v3224_v62 }
 0x54b   :  { %v1361_v2 = vadd.f32 %v1360_v8, %v3220_v42  ;;  %v1362_v11 = vpop.f32.mrb[18].mxu0  ;;  %v1402_v13 = vpop.f32.mrb[18].mxu1 }
 0x54c   :  { %v1405_v14 = vadd.f32 %v1359_v7, %v1160_v25  ;;  %v1363_v17 = vpop.f32.mrb[19].mxu0  ;;  %v2651_v19 = vpop.f32.mrb[19].mxu1 }
 0x54d   :  { %v1412_v22 = vadd.f32 %v1361_v2, %v1161_v16  ;;  %v1430_v2 = vld [vmem:[#allocation3 + $0x80] sm:$0xff] }
 0x54e   :  { %v2400_v20 = vmul.f32 -1.442695, %v1405_v14 }
 0x54f   :  { %v2401_v29 = vmul.f32 -1.442695, %v1412_v22 }
 0x550   :  { %2878 = vpow2.f32 %v2400_v20 }
 0x551   :  { %2880 = vpow2.f32 %v2401_v29 }
 0x55a   :  { %v2879_v30 = vpop.eup %2878 }
 0x55b   :  { %v1409_v31 = vadd.f32 1.0, %v2879_v30  ;;  %v2881_v23 = vpop.eup %2880 }
 0x55c   :  { %v1416_v32 = vadd.f32 1.0, %v2881_v23  ;;  %v1431_v23 = vld [vmem:[#allocation3 + $0x88] sm:$0xff] }
 0x55d   :  { %2882 = vrcp.f32 %v1409_v31 }
 0x55e   :  { %2884 = vrcp.f32 %v1416_v32 }
 0x567   :  { %v2883_v34 = vpop.eup %2882 }
 0x568   :  { %v1419_v36 = vmul.f32 %v2883_v34, %v1400_v33  ;;  %v2885_v38 = vpop.eup %2884 }
 0x569   :  { %v1422_v39 = vsub.f32 1.0, %v2885_v38  ;;  %v1424_v44 = vmul.f32 %v2885_v38, %v3363_v48  ;;  %v2823_v48 = vld [vmem:[#allocation8 + $0x20] ss:$12 sps:$4 sm:$0xff]  }
 0x56a   :  { %v1420_v37 = vadd.f32 %v1419_v36, %v1162_v35 }
 0x56c   :  { %2886 = vtanh.f32 %v1420_v37 }
 0x576   :  { %v2887_v40 = vpop.eup %2886 }
 0x577   :  { %v1423_v43 = vmul.f32 %v2887_v40, %v1422_v39 }
 0x579   :  { %v3404_v45 = vadd.f32 %v1424_v44, %v1423_v43 }
 0x57b   :  { %1427 = vst [vmem:[#allocation9 + $0x20] sm:$0xff] %v3404_v45  ;;  %v1432_v46 = vpack.c.bf16 %v3404_v45, %v3404_v45 }
 0x57d   :  { %1626 = vmatmul.mubr.bf16.vlgmr.msra.gmra.mrb[20].mxu0 %v1432_v46  ;;  %2669 = vmatmul.mubr.bf16.vlgmr.msra.gmra.mrb[20].mxu1 %v1432_v46 }
 0x57e   :  { %1863 = vmatpush1.bf16.msra.mxu0 %v3373_v51  ;;  %1894 = vmatprep.mubr.bf16.mxu0 %v3044_v1 }
 0x57f   :  { %1864 = vmatprep.subr.bf16.mxu0 %v3309_v56  ;;  %2688 = vmatprep.mubr.msk.bf16.mxu1 %vm3045_vm0, %v3043_v0 }
 0x580   :  { %2673 = vmatpush3.bf16.msra.mxu1 %v2822_v47 }
 0x581   :  { %2674 = vmatprep.subr.bf16.mxu1 %v3043_v0 }
 0x582   :  { %1865 = vmatpush1.bf16.msra.mxu0 %v3312_v57 }
 0x583   :  { %1866 = vmatprep.subr.bf16.mxu0 %v3316_v3 }
 0x584   :  { %2675 = vmatpush3.bf16.msra.mxu1 %v2823_v48 }
 0x585   :  { %2676 = vmatprep.subr.bf16.mxu1 %v3043_v0 }
 0x586   :  { %1867 = vmatpush1.bf16.msra.mxu0 %v3319_v59 }
 0x587   :  { %1868 = vmatprep.subr.bf16.mxu0 %v3323_v61 }
 0x588   :  { %2677 = vmatpush3.bf16.msra.mxu1 %v2824_v49 }
 0x589   :  { %2678 = vmatprep.subr.bf16.mxu1 %v3043_v0 }
 0x58a   :  { %1869 = vmatpush1.bf16.msra.mxu0 %v3326_v63 }
 0x58b   :  { %1870 = vmatprep.subr.bf16.mxu0 %v3330_v12 }
 0x58c   :  { %2679 = vmatpush3.bf16.msra.mxu1 %v2825_v52 }
 0x58d   :  { %2680 = vmatprep.subr.bf16.mxu1 %v3043_v0 }
 0x58e   :  { %1871 = vmatpush1.bf16.msra.mxu0 %v3333_v15 }
 0x58f   :  { %1872 = vmatprep.subr.bf16.mxu0 %v3336_v21 }
 0x590   :  { %2681 = vmatpush3.bf16.msra.mxu1 %v2826_v53 }
 0x591   :  { %2682 = vmatprep.subr.bf16.mxu1 %v3043_v0 }
 0x592   :  { %1873 = vmatpush1.bf16.msra.mxu0 %v3339_v24 }
 0x593   :  { %1874 = vmatprep.subr.bf16.mxu0 %v3343_v26 }
 0x594   :  { %2683 = vmatpush3.bf16.msra.mxu1 %v2827_v54 }
 0x595   :  { %2684 = vmatprep.subr.bf16.mxu1 %v3043_v0 }
 0x596   :  { %1875 = vmatpush1.bf16.msra.mxu0 %v3346_v27 }
 0x597   :  { %1876 = vmatprep.subr.bf16.mxu0 %v3350_v4 }
 0x59a   :  { %1877 = vmatpush1.bf16.msra.mxu0 %v3353_v5 }
 0x59b   :  { %2131 = vmatprep.subr.bf16.mxu0 %v3371_v50  ;;  %v2828_v50 = vld [vmem:[#allocation8 + $0x98] ss:$12 sps:$4 sm:$0xff]  }
 0x59c   :  { %2685 = vmatpush3.bf16.msra.mxu1 %v2828_v50 }
 0x59d   :  { %2686 = vmatprep.subr.bf16.mxu1 %v3043_v0 }
 0x5a0   :  { %2687 = vmatpush3.bf16.msra.mxu1 %v2829_v55 }
 0x5a1   :  { %2692 = vmatprep.subr.bf16.mxu1 %v3043_v0 }
 0x650   :  { %v1627_v60 = vpop.f32.mrb[20].mxu0  ;;  %v1668_v9 = vpop.f32.mrb[20].mxu1 }
 0x651   :  { %v1628_v18 = vadd.f32 %v1627_v60, %v3218_v41  ;;  %v1629_v25 = vpop.f32.mrb[21].mxu0  ;;  %v2670_v28 = vpop.f32.mrb[21].mxu1  ;;  %v1669_v30 = vadd.f32 %v1668_v9, %v3224_v62  ;;  %v1700_v60 = vld [vmem:[#allocation3 + $0xa0] sm:$0xff] }
 0x652   :  { %v1630_v6 = vadd.f32 %v1629_v25, %v3220_v42  ;;  %v1631_v7 = vpop.f32.mrb[22].mxu0  ;;  %v1671_v8 = vpop.f32.mrb[22].mxu1 }
 0x653   :  { %v1674_v10 = vadd.f32 %v1628_v18, %v1429_v58  ;;  %v1632_v11 = vpop.f32.mrb[23].mxu0  ;;  %v2671_v13 = vpop.f32.mrb[23].mxu1 }
 0x654   :  { %v1681_v16 = vadd.f32 %v1630_v6, %v1430_v2  ;;  %v1967_v11 = vld [vmem:[#allocation3 + $0xa8] sm:$0xff] }
 0x655   :  { %v2426_v14 = vmul.f32 -1.442695, %v1674_v10 }
 0x656   :  { %v2427_v17 = vmul.f32 -1.442695, %v1681_v16 }
 0x657   :  { %2888 = vpow2.f32 %v2426_v14 }
 0x658   :  { %2890 = vpow2.f32 %v2427_v17 }
 0x661   :  { %v2889_v19 = vpop.eup %2888 }
 0x662   :  { %v1678_v20 = vadd.f32 1.0, %v2889_v19  ;;  %v2891_v22 = vpop.eup %2890 }
 0x663   :  { %v1685_v29 = vadd.f32 1.0, %v2891_v22 }
 0x664   :  { %2892 = vrcp.f32 %v1678_v20 }
 0x665   :  { %2894 = vrcp.f32 %v1685_v29 }
 0x66e   :  { %v2893_v31 = vpop.eup %2892 }
 0x66f   :  { %v1688_v32 = vmul.f32 %v2893_v31, %v1669_v30  ;;  %v2895_v34 = vpop.eup %2894  ;;  %v1968_v31 = vld [vmem:[#allocation3 + $0xb0] sm:$0xff] }
 0x670   :  { %v1691_v35 = vsub.f32 1.0, %v2895_v34  ;;  %v1693_v38 = vmul.f32 %v2895_v34, %v3404_v45  ;;  %v1699_v45 = vld [vmem:[#allocation3 + $0x98] sm:$0xff] }
 0x671   :  { %v1689_v33 = vadd.f32 %v1688_v32, %v1431_v23 }
 0x673   :  { %2896 = vtanh.f32 %v1689_v33 }
 0x67d   :  { %v2897_v36 = vpop.eup %2896 }
 0x67e   :  { %v1692_v37 = vmul.f32 %v2897_v36, %v1691_v35 }
 0x680   :  { %v3440_v39 = vadd.f32 %v1693_v38, %v1692_v37 }
 0x682   :  { %1696 = vst [vmem:[#allocation9 + $0x28] sm:$0xff] %v3440_v39  ;;  %v1701_v40 = vpack.c.bf16 %v3440_v39, %v3440_v39 }
 0x684   :  { %1895 = vmatmul.mubr.bf16.vlgmr.msra.gmra.mrb[24].mxu0 %v1701_v40  ;;  %2689 = vmatmul.mubr.bf16.vlgmr.msra.gmra.mrb[24].mxu1 %v1701_v40 }
 0x685   :  { %2132 = vmatpush1.bf16.msra.mxu0 %v3373_v51  ;;  %2163 = vmatprep.mubr.bf16.mxu0 %v3044_v1  ;;  %v2830_v1 = vld [vmem:[#allocation8 + $0x8] ss:$12 sps:$4 sm:$0xff]  }
 0x686   :  { %2133 = vmatprep.subr.bf16.mxu0 %v3309_v56  ;;  %2708 = vmatprep.mubr.msk.bf16.mxu1 %vm3045_vm0, %v3043_v0  ;;  %v2831_v56 = vld [vmem:[#allocation8 + $0x20] ss:$12 sps:$4 sm:$0xff]  }
 0x687   :  { %2693 = vmatpush3.bf16.msra.mxu1 %v2830_v1 }
 0x688   :  { %2694 = vmatprep.subr.bf16.mxu1 %v3043_v0 }
 0x689   :  { %2134 = vmatpush1.bf16.msra.mxu0 %v3312_v57  ;;  %v2832_v57 = vld [vmem:[#allocation8 + $0x38] ss:$12 sps:$4 sm:$0xff]  }
 0x68a   :  { %2135 = vmatprep.subr.bf16.mxu0 %v3316_v3  ;;  %v2833_v3 = vld [vmem:[#allocation8 + $0x50] ss:$12 sps:$4 sm:$0xff]  }
 0x68b   :  { %2695 = vmatpush3.bf16.msra.mxu1 %v2831_v56 }
 0x68c   :  { %2696 = vmatprep.subr.bf16.mxu1 %v3043_v0 }
 0x68d   :  { %2136 = vmatpush1.bf16.msra.mxu0 %v3319_v59  ;;  %v2834_v59 = vld [vmem:[#allocation8 + $0x68] ss:$12 sps:$4 sm:$0xff]  }
 0x68e   :  { %2137 = vmatprep.subr.bf16.mxu0 %v3323_v61  ;;  %v2835_v61 = vld [vmem:[#allocation8 + $0x80] ss:$12 sps:$4 sm:$0xff]  }
 0x68f   :  { %2697 = vmatpush3.bf16.msra.mxu1 %v2832_v57 }
 0x690   :  { %2698 = vmatprep.subr.bf16.mxu1 %v3043_v0 }
 0x691   :  { %2138 = vmatpush1.bf16.msra.mxu0 %v3326_v63  ;;  %v2836_v63 = vld [vmem:[#allocation8 + $0x98] ss:$12 sps:$4 sm:$0xff]  }
 0x692   :  { %2139 = vmatprep.subr.bf16.mxu0 %v3330_v12  ;;  %v2837_v12 = vld [vmem:[#allocation8 + $0xb0] ss:$12 sps:$4 sm:$0xff]  }
 0x693   :  { %2699 = vmatpush3.bf16.msra.mxu1 %v2833_v3 }
 0x694   :  { %2700 = vmatprep.subr.bf16.mxu1 %v3043_v0 }
 0x695   :  { %2140 = vmatpush1.bf16.msra.mxu0 %v3333_v15  ;;  %v1698_v15 = vld [vmem:[#allocation3 + $0x90] sm:$0xff] }
 0x696   :  { %2141 = vmatprep.subr.bf16.mxu0 %v3336_v21 }
 0x697   :  { %2701 = vmatpush3.bf16.msra.mxu1 %v2834_v59 }
 0x698   :  { %2702 = vmatprep.subr.bf16.mxu1 %v3043_v0 }
 0x699   :  { %2142 = vmatpush1.bf16.msra.mxu0 %v3339_v24 }
 0x69a   :  { %2143 = vmatprep.subr.bf16.mxu0 %v3343_v26 }
 0x69b   :  { %2703 = vmatpush3.bf16.msra.mxu1 %v2835_v61 }
 0x69c   :  { %2704 = vmatprep.subr.bf16.mxu1 %v3043_v0 }
 0x69d   :  { %2144 = vmatpush1.bf16.msra.mxu0 %v3346_v27 }
 0x69e   :  { %2145 = vmatprep.subr.bf16.mxu0 %v3350_v4 }
 0x69f   :  { %2705 = vmatpush3.bf16.msra.mxu1 %v2836_v63 }
 0x6a0   :  { %2706 = vmatprep.subr.bf16.mxu1 %v3043_v0 }
 0x6a1   :  { %2146 = vmatpush1.bf16.msra.mxu0 %v3353_v5 }
 0x6a3   :  { %2707 = vmatpush3.bf16.msra.mxu1 %v2837_v12 }
 0x757   :  { %v1896_v21 = vpop.f32.mrb[24].mxu0  ;;  %v1937_v24 = vpop.f32.mrb[24].mxu1 }
 0x758   :  { %v1897_v26 = vadd.f32 %v1896_v21, %v3218_v41  ;;  %v1898_v27 = vpop.f32.mrb[25].mxu0  ;;  %v2690_v4 = vpop.f32.mrb[25].mxu1  ;;  %v1938_v55 = vadd.f32 %v1937_v24, %v3224_v62 }
 0x759   :  { %v1899_v5 = vadd.f32 %v1898_v27, %v3220_v42  ;;  %v1900_v51 = vpop.f32.mrb[26].mxu0  ;;  %v1940_v43 = vpop.f32.mrb[26].mxu1 }
 0x75a   :  { %v1943_v44 = vadd.f32 %v1897_v26, %v1698_v15  ;;  %v1901_v46 = vpop.f32.mrb[27].mxu0  ;;  %v2691_v47 = vpop.f32.mrb[27].mxu1 }
 0x75b   :  { %v1950_v49 = vadd.f32 %v1899_v5, %v1699_v45 }
 0x75c   :  { %v2452_v48 = vmul.f32 -1.442695, %v1943_v44 }
 0x75d   :  { %v2453_v0 = vmul.f32 -1.442695, %v1950_v49 }
 0x75e   :  { %2898 = vpow2.f32 %v2452_v48 }
 0x75f   :  { %2900 = vpow2.f32 %v2453_v0 }
 0x768   :  { %v2899_v52 = vpop.eup %2898 }
 0x769   :  { %v1947_v53 = vadd.f32 1.0, %v2899_v52  ;;  %v2901_v54 = vpop.eup %2900 }
 0x76a   :  { %v1954_v50 = vadd.f32 1.0, %v2901_v54 }
 0x76b   :  { %2902 = vrcp.f32 %v1947_v53 }
 0x76c   :  { %2904 = vrcp.f32 %v1954_v50 }
 0x775   :  { %v2903_v58 = vpop.eup %2902 }
 0x776   :  { %v1957_v9 = vmul.f32 %v2903_v58, %v1938_v55  ;;  %v2905_v25 = vpop.eup %2904 }
 0x777   :  { %v1960_v28 = vsub.f32 1.0, %v2905_v25  ;;  %v1962_v8 = vmul.f32 %v2905_v25, %v3440_v39 }
 0x778   :  { %v1958_v18 = vadd.f32 %v1957_v9, %v1700_v60 }
 0x77a   :  { %2906 = vtanh.f32 %v1958_v18 }
 0x784   :  { %v2907_v6 = vpop.eup %2906 }
 0x785   :  { %v1961_v7 = vmul.f32 %v2907_v6, %v1960_v28 }
 0x787   :  { %v1963_v10 = vadd.f32 %v1962_v8, %v1961_v7 }
 0x789   :  { %1965 = vst [vmem:[#allocation9 + $0x30] sm:$0xff] %v1963_v10  ;;  %v1970_v2 = vpack.c.bf16 %v1963_v10, %v1963_v10 }
 0x78b   :  { %2164 = vmatmul.mubr.bf16.vlgmr.msra.gmra.mrb[28].mxu0 %v1970_v2  ;;  %2709 = vmatmul.mubr.bf16.vlgmr.msra.gmra.mrb[28].mxu1 %v1970_v2 }
 0x85e   :  { %v2165_v13 = vpop.f32.mrb[28].mxu0  ;;  %v2206_v14 = vpop.f32.mrb[28].mxu1 }
 0x85f   :  { %v2166_v16 = vadd.f32 %v2165_v13, %v3218_v41  ;;  %v2167_v17 = vpop.f32.mrb[29].mxu0  ;;  %v2710_v19 = vpop.f32.mrb[29].mxu1  ;;  %v2207_v39 = vadd.f32 %v2206_v14, %v3224_v62 }
 0x860   :  { %v2168_v20 = vadd.f32 %v2167_v17, %v3220_v42  ;;  %v2169_v22 = vpop.f32.mrb[30].mxu0  ;;  %v2209_v29 = vpop.f32.mrb[30].mxu1  ;;  %v1969_v42 = vld [vmem:[#allocation3 + $0xb8] sm:$0xff] }
 0x861   :  { %v2212_v30 = vadd.f32 %v2166_v16, %v1967_v11  ;;  %v2170_v23 = vpop.f32.mrb[31].mxu0  ;;  %v2711_v32 = vpop.f32.mrb[31].mxu1 }
 0x862   :  { %v2219_v34 = vadd.f32 %v2168_v20, %v1968_v31 }
 0x863   :  { %v2478_v33 = vmul.f32 -1.442695, %v2212_v30 }
 0x864   :  { %v2479_v35 = vmul.f32 -1.442695, %v2219_v34 }
 0x865   :  { %2908 = vpow2.f32 %v2478_v33 }
 0x866   :  { %2910 = vpow2.f32 %v2479_v35 }
 0x86f   :  { %v2909_v36 = vpop.eup %2908 }
 0x870   :  { %v2216_v37 = vadd.f32 1.0, %v2909_v36  ;;  %v2911_v38 = vpop.eup %2910 }
 0x871   :  { %v2223_v41 = vadd.f32 1.0, %v2911_v38 }
 0x872   :  { %2912 = vrcp.f32 %v2216_v37 }
 0x873   :  { %2914 = vrcp.f32 %v2223_v41 }
 0x87c   :  { %v2913_v40 = vpop.eup %2912 }
 0x87d   :  { %v2226_v1 = vmul.f32 %v2913_v40, %v2207_v39  ;;  %v2915_v57 = vpop.eup %2914 }
 0x87e   :  { %v2229_v3 = vsub.f32 1.0, %v2915_v57  ;;  %v2231_v63 = vmul.f32 %v2915_v57, %v1963_v10 }
 0x87f   :  { %v2227_v56 = vadd.f32 %v2226_v1, %v1969_v42 }
 0x881   :  { %2916 = vtanh.f32 %v2227_v56 }
 0x88b   :  { %v2917_v59 = vpop.eup %2916 }
 0x88c   :  { %v2230_v61 = vmul.f32 %v2917_v59, %v2229_v3 }
 0x88e   :  { %v2232_v12 = vadd.f32 %v2231_v63, %v2230_v61 }
 0x890   :  { %2234 = vst [vmem:[#allocation9 + $0x38] sm:$0xff] %v2232_v12  ;;  %2239 = vst [vmem:[#allocation10] sm:$0xff] %v2232_v12 }
 0x891   :  { %2995 = shalt.err (!%p2992_p0)
}
 0x892   :  { %s2996_s13 = scalar_lea.hbm %s3512_s4, 1024 }
 0x893   :  { %p2997_p1 = scmp.ne.s32.totalorder %s3512_s4, %s2996_s13  ;;  %p3000_p2 = scmp.lt.u32.totalorder %s2996_s13, %s3512_s4 }
 0x895   :  { %p3002_p3 = pnand %p3000_p2, %p2997_p1 }
 0x897   :  { %3005 = shalt.err (!%p3002_p3)
}
 0x898   :  { %s3048_s17 = smov 128   ;;  %s3049_s18 = smov 8  }
 0x899   :  { %2251 = dma.vmem_to_hbm [thread:$0]  %s2246_s7, 1024, %s3512_s4, [#allocation5], %s3048_s17, %s3048_s17, %s3049_s18  }
 0x89a   :  { %s3006_s22 = scalar_lea.vmem %s3477_s9, 128  ;;  %p3011_p5 = scmp.lt.s32.totalorder %s3477_s9, %s3477_s9 }
 0x89b   :  { %p3007_p4 = scmp.ne.s32.totalorder %s3477_s9, %s3006_s22  ;;  %p3012_p6 = scmp.lt.s32.totalorder %s3006_s22, %s3006_s22 }
 0x89d   :  { %p3013_p7 = por %p3012_p6, %p3011_p5 }
 0x89f   :  { %p3014_p8 = pnand %p3013_p7, %p3007_p4 }
 0x8a1   :  { %3017 = shalt.err (!%p3014_p8)
}
 0x8a2   :  { %s3018_s25 = scalar_lea.hbm %s3513_s5, 128 }
 0x8a3   :  { %p3019_p9 = scmp.ne.s32.totalorder %s3513_s5, %s3018_s25  ;;  %p3022_p10 = scmp.lt.u32.totalorder %s3018_s25, %s3513_s5 }
 0x8a5   :  { %p3024_p11 = pnand %p3022_p10, %p3019_p9 }
 0x8a7   :  { %3027 = shalt.err (!%p3024_p11)
}
 0x8a8   :  { %2261 = dma.vmem_to_hbm [thread:$0]  %s3477_s9, 128, %s3513_s5, [#allocation11]  }
 0x8a9   :  { %3032 = dma.done.wait [#allocation5], 1024  }
 0x8aa   :  { %3033 = vsyncadd [#allocation5], 4294966272 }
 0x8ab   :  { %3034 = dma.done.wait [#allocation11], 128  }
 0x8ac   :  { %3035 = vsyncadd [#allocation11], 4294967168 }
 0x8ad   :  { %2268 = vsyncpa [#allocation4], 1 }
 0x8ae   :  { %2269 = vsyncpa [#allocation7], 1 }
 0x8af   :  { %2270 = vsyncpa [#allocation5], 1 }
 0x8b0   :  { %2271 = vsyncpa [#allocation11], 1 }

</bundles_post_ra>
